<compile_context>
chip_gen: v5e
topology: v5e:2x2
jax: 0.10.0
libtpu: 0.0.40
codegen_flags: <defaults>
</compile_context>

<pallas_src>
import functools

import jax
import jax.numpy as jnp
from jax import lax
from jax.experimental import pallas as pl
from jax.experimental.pallas import tpu as pltpu


# Interior column offset inside the scratch.  16 is a multiple of the native
# sublane tile for both f32 (8) and bf16 (16), so the per-step interior store
# is tile-aligned even though the logical halo needs a 1-px offset.
_PAD = 16


# ---------------------------------------------------------------------------
# Fused InvertedResidual kernel
# ---------------------------------------------------------------------------

def _fused_block_kernel(*refs, H, W, H_out, W_out, stride, has_expand,
                        use_res, mxu_dtype, hidden_dtype):
    if has_expand:
        (x_ref, w_exp_ref, s1_ref, b1_ref,
         w_dw_ref, s2_ref, b2_ref,
         w_proj_ref, s3_ref, b3_ref,
         o_ref, hpad_ref) = refs
    else:
        (x_ref,
         w_dw_ref, s2_ref, b2_ref,
         w_proj_ref, s3_ref, b3_ref,
         o_ref, hpad_ref) = refs

    Chid = w_dw_ref.shape[-1]
    Wp = hpad_ref.shape[1]

    # x arrives pre-flattened as (H*W, Cin) "tokens" (free XLA reshape outside).
    x2d = x_ref[0]

    # ---- stage 1: 1x1 expand conv + BN + ReLU6 (MXU) ----------------------
    if has_expand:
        h = jnp.dot(x2d.astype(mxu_dtype), w_exp_ref[...],
                    preferred_element_type=jnp.float32)
        h = jnp.clip(h * s1_ref[...] + b1_ref[...], 0.0, 6.0)
        h3 = h.reshape(H, W, Chid)               # leading-dim split: cheap
    else:
        h3 = x2d.reshape(H, W, Chid)

    # ---- stage 2: 3x3 depthwise conv + BN + ReLU6 (VPU) -------------------
    # Zero ONLY the 1-pixel halo (2 rows + 2 columns); the interior is fully
    # overwritten below, so no full-scratch fill is needed.
    hpad_ref[0:1, :, :] = jnp.zeros((1, Wp, Chid), hidden_dtype)
    hpad_ref[H + 1:H + 2, :, :] = jnp.zeros((1, Wp, Chid), hidden_dtype)
    hpad_ref[:, _PAD - 1:_PAD, :] = jnp.zeros((H + 2, 1, Chid), hidden_dtype)
    hpad_ref[:, _PAD + W:_PAD + W + 1, :] = jnp.zeros((H + 2, 1, Chid),
                                                      hidden_dtype)
    # Tile-aligned interior store (column offset _PAD, width W).
    hpad_ref[1:H + 1, _PAD:_PAD + W, :] = h3.astype(hidden_dtype)

    w_dw = w_dw_ref[...]                          # (9, Chid) f32, loaded once
    acc = None
    for dy in range(3):
        for dx in range(3):
            c0 = _PAD - 1 + dx
            if stride == 1:
                tap = hpad_ref[dy:dy + H_out, c0:c0 + W_out, :]
            else:
                # Strided read: only the stride-2 output positions are ever
                # loaded / multiplied (lane-dim stride stays 1).
                tap = hpad_ref[pl.ds(dy, H_out, stride=stride),
                               pl.ds(c0, W_out, stride=stride), :]
            term = tap.astype(jnp.float32) * w_dw[dy * 3 + dx]
            acc = term if acc is None else acc + term   # init from first tap
    y = jnp.clip(acc * s2_ref[...] + b2_ref[...], 0.0, 6.0)

    # ---- stage 3: 1x1 projection conv + BN (+ residual) (MXU) -------------
    y2d = y.reshape(H_out * W_out, Chid)
    out = jnp.dot(y2d.astype(mxu_dtype), w_proj_ref[...],
                  preferred_element_type=jnp.float32)
    out = out * s3_ref[...] + b3_ref[...]
    if use_res:
        out = out + x2d.astype(jnp.float32)      # stride==1 and Cin==Cout here
    o_ref[0] = out.astype(o_ref.dtype)


def inverted_residual_nhwc(x_nhwc, params, *, stride, expand_ratio, use_res,
                           mxu_dtype=jnp.bfloat16):
    """Fused InvertedResidual forward, NHWC in / NHWC out."""
    N, H, W, Cin = x_nhwc.shape
    has_expand = expand_ratio != 1
    Chid = params['w_dw'].shape[-1]
    Cout = params['w_proj'].shape[-1]
    H_out = (H - 1) // stride + 1
    W_out = (W - 1) // stride + 1
    # bf16 hidden scratch only when the MXU path is bf16 (v6e/v7x); the f32
    # MXU path (v5e: no bf16 VPU) keeps an f32 scratch.
    hidden_dtype = jnp.bfloat16 if mxu_dtype == jnp.bfloat16 else jnp.float32
    Wp = _PAD + W + 8            # aligned interior start + right halo column

    def rep(shape):  # same (full) parameter block for every grid step
        return pl.BlockSpec(shape, lambda n: (0,) * len(shape))

    # Flattened "token" views: contiguous reshapes, free in XLA.
    x_tok = x_nhwc.reshape(N, H * W, Cin)

    inputs = [x_tok]
    in_specs = [pl.BlockSpec((1, H * W, Cin), lambda n: (n, 0, 0))]
    if has_expand:
        inputs += [params['w_expand'].astype(mxu_dtype),       # pre-cast once
                   params['bn1_scale'].reshape(1, Chid),
                   params['bn1_shift'].reshape(1, Chid)]
        in_specs += [rep((Cin, Chid)), rep((1, Chid)), rep((1, Chid))]
    inputs += [params['w_dw'].reshape(9, Chid),
               params['bn2_scale'].reshape(1, Chid),
               params['bn2_shift'].reshape(1, Chid),
               params['w_proj'].astype(mxu_dtype),             # pre-cast once
               params['bn3_scale'].reshape(1, Cout),
               params['bn3_shift'].reshape(1, Cout)]
    in_specs += [rep((9, Chid)), rep((1, Chid)), rep((1, Chid)),
                 rep((Chid, Cout)), rep((1, Cout)), rep((1, Cout))]

    # Explicit scoped-VMEM budget: scratch + double-buffered in/out tiles +
    # (double-buffered) params + in-kernel f32 temporaries, with headroom.
    x_isz = jnp.dtype(x_nhwc.dtype).itemsize
    est = ((H + 2) * Wp * Chid * jnp.dtype(hidden_dtype).itemsize
           + 2 * H * W * Cin * x_isz
           + 2 * H_out * W_out * Cout * x_isz
           + 2 * sum(int(a.size) * jnp.dtype(a.dtype).itemsize
                     for a in inputs[1:])
           + 6 * H * W * Chid * 4
           + (2 << 20))
    vmem_limit = int(min(100 * 2 ** 20, max(est, 32 * 2 ** 20)))

    kernel = functools.partial(
        _fused_block_kernel, H=H, W=W, H_out=H_out, W_out=W_out,
        stride=stride, has_expand=has_expand, use_res=use_res,
        mxu_dtype=mxu_dtype, hidden_dtype=hidden_dtype)

    out_tok = pl.pallas_call(
        kernel,
        out_shape=jax.ShapeDtypeStruct((N, H_out * W_out, Cout), x_nhwc.dtype),
        grid=(N,),
        in_specs=in_specs,
        out_specs=pl.BlockSpec((1, H_out * W_out, Cout), lambda n: (n, 0, 0)),
        scratch_shapes=[pltpu.VMEM((H + 2, Wp, Chid), hidden_dtype)],
        compiler_params=pltpu.CompilerParams(
            dimension_semantics=("parallel",),
            vmem_limit_bytes=vmem_limit),
    )(*inputs)

    return out_tok.reshape(N, H_out, W_out, Cout)


# ---------------------------------------------------------------------------
# Module
# ---------------------------------------------------------------------------

class InvertedResidualPallas:
    def __init__(self, inp, oup, stride, expand_ratio, key,
                 mxu_dtype=jnp.bfloat16):
        assert stride in (1, 2)
        self.inp, self.oup, self.stride = inp, oup, stride
        self.expand_ratio = expand_ratio
        self.hidden = int(round(inp * expand_ratio))
        self.use_res_connect = (stride == 1) and (inp == oup)
        self.mxu_dtype = mxu_dtype
        eps = 1e-5

        keys = jax.random.split(key, 6)

        def bn_params(k, c):
            k1, k2, k3, k4 = jax.random.split(k, 4)
            gamma = 1.0 + 0.1 * jax.random.normal(k1, (c,), jnp.float32)
            beta = 0.1 * jax.random.normal(k2, (c,), jnp.float32)
            mean = 0.1 * jax.random.normal(k3, (c,), jnp.float32)
            var = jnp.abs(1.0 + 0.1 * jax.random.normal(k4, (c,), jnp.float32))
            scale = gamma / jnp.sqrt(var + eps)   # eval-mode BN folded
            shift = beta - mean * scale
            return scale, shift

        p = {}
        if expand_ratio != 1:
            p['w_expand'] = 0.1 * jax.random.normal(
                keys[0], (inp, self.hidden), jnp.float32)
            p['bn1_scale'], p['bn1_shift'] = bn_params(keys[1], self.hidden)
        p['w_dw'] = 0.1 * jax.random.normal(
            keys[2], (3, 3, self.hidden), jnp.float32)
        p['bn2_scale'], p['bn2_shift'] = bn_params(keys[3], self.hidden)
        p['w_proj'] = 0.1 * jax.random.normal(
            keys[4], (self.hidden, oup), jnp.float32)
        p['bn3_scale'], p['bn3_shift'] = bn_params(keys[5], oup)
        self.params = p

    def forward_nhwc(self, x_nhwc):
        return inverted_residual_nhwc(
            x_nhwc, self.params, stride=self.stride,
            expand_ratio=self.expand_ratio, use_res=self.use_res_connect,
            mxu_dtype=self.mxu_dtype)

    def __call__(self, x_nchw):
        # NCHW boundary for parity with the PyTorch module; a full backbone
        # should chain forward_nhwc() (ideally in bf16) and transpose only at
        # network entry/exit.
        x = jnp.transpose(x_nchw, (0, 2, 3, 1))
        out = self.forward_nhwc(x)
        return jnp.transpose(out, (0, 3, 1, 2))


# ---------------------------------------------------------------------------
# Pure-JAX reference (independent of the Pallas path) for validation
# ---------------------------------------------------------------------------

def reference_forward(m, x_nchw):
    x = jnp.transpose(x_nchw, (0, 2, 3, 1))
    p = m.params
    h = x
    if m.expand_ratio != 1:
        h = jnp.einsum('nhwc,cd->nhwd', h, p['w_expand'])
        h = jnp.clip(h * p['bn1_scale'] + p['bn1_shift'], 0.0, 6.0)
    w = p['w_dw'][:, :, None, :]   # HWIO with I=1 (depthwise)
    h = lax.conv_general_dilated(
        h, w, window_strides=(m.stride, m.stride), padding=((1, 1), (1, 1)),
        dimension_numbers=('NHWC', 'HWIO', 'NHWC'),
        feature_group_count=m.hidden)
    h = jnp.clip(h * p['bn2_scale'] + p['bn2_shift'], 0.0, 6.0)
    h = jnp.einsum('nhwc,cd->nhwd', h, p['w_proj'])
    h = h * p['bn3_scale'] + p['bn3_shift']
    if m.use_res_connect:
        h = h + x
    return jnp.transpose(h, (0, 3, 1, 2))


# ---------------------------------------------------------------------------

if __name__ == "__main__":
    key = jax.random.PRNGKey(0)

    configs = [
        # (inp, oup, stride, expand_ratio)
        (8, 8, 1, 4),    # residual path, expansion
        (8, 16, 2, 4),   # stride-2 (computed strided in-kernel), no residual
        (16, 16, 1, 1),  # expand_ratio == 1 path, residual
    ]

    for idx, (inp, oup, stride, er) in enumerate(configs):
        k_mod, k_x, key = jax.random.split(key, 3)
        x = jax.random.normal(k_x, (2, inp, 16, 16), jnp.float32)  # NCHW

        # f32 MXU path (v5e setting) checked tight; bf16 MXU + bf16 hidden
        # scratch path (v6e/v7x setting) checked at bf16-level tolerance.
        for mxu_dtype, tol in ((jnp.float32, 1e-4), (jnp.bfloat16, 5e-2)):
            module = InvertedResidualPallas(inp, oup, stride, er, k_mod,
                                            mxu_dtype=mxu_dtype)
            out = jax.block_until_ready(module(x))
            ref = jax.block_until_ready(reference_forward(module, x))

            assert out.shape == ref.shape, (out.shape, ref.shape)
            err = float(jnp.max(jnp.abs(out - ref)))
            assert jnp.allclose(out, ref, atol=tol, rtol=tol), (
                f"mismatch config {idx} "
                f"(mxu={jnp.dtype(mxu_dtype).name}): max err {err}")

    print("KERNEL_OK")
</pallas_src>

<mosaic_0001>
module attributes {stable_mosaic.version = 11 : i64} {
  func.func @_fused_block_kernel(%arg0: i32, %arg1: memref<1x256x8xf32, #tpu.memory_space<vmem>>, %arg2: memref<8x32xf32, #tpu.memory_space<vmem>>, %arg3: memref<1x32xf32, #tpu.memory_space<vmem>>, %arg4: memref<1x32xf32, #tpu.memory_space<vmem>>, %arg5: memref<9x32xf32, #tpu.memory_space<vmem>>, %arg6: memref<1x32xf32, #tpu.memory_space<vmem>>, %arg7: memref<1x32xf32, #tpu.memory_space<vmem>>, %arg8: memref<32x8xf32, #tpu.memory_space<vmem>>, %arg9: memref<1x8xf32, #tpu.memory_space<vmem>>, %arg10: memref<1x8xf32, #tpu.memory_space<vmem>>, %arg11: memref<1x256x8xf32, #tpu.memory_space<vmem>>, %arg12: memref<18x40x32xf32, #tpu.memory_space<vmem>>) attributes {dimension_semantics = [#tpu.dimension_semantics<parallel>], iteration_bounds = array<i64: 2>, scalar_prefetch = 0 : i64, scratch_operands = 1 : i64, tpu.core_type = #tpu.core_type<tc>, window_params = [{transform_indices = @transform_0, window_bounds = array<i64: 1, 256, 8>}, {pipeline_mode = #tpu.pipeline_mode<synchronous>, transform_indices = @transform_1, window_bounds = array<i64: 8, 32>}, {pipeline_mode = #tpu.pipeline_mode<synchronous>, transform_indices = @transform_2, window_bounds = array<i64: 1, 32>}, {pipeline_mode = #tpu.pipeline_mode<synchronous>, transform_indices = @transform_3, window_bounds = array<i64: 1, 32>}, {pipeline_mode = #tpu.pipeline_mode<synchronous>, transform_indices = @transform_4, window_bounds = array<i64: 9, 32>}, {pipeline_mode = #tpu.pipeline_mode<synchronous>, transform_indices = @transform_5, window_bounds = array<i64: 1, 32>}, {pipeline_mode = #tpu.pipeline_mode<synchronous>, transform_indices = @transform_6, window_bounds = array<i64: 1, 32>}, {pipeline_mode = #tpu.pipeline_mode<synchronous>, transform_indices = @transform_7, window_bounds = array<i64: 32, 8>}, {pipeline_mode = #tpu.pipeline_mode<synchronous>, transform_indices = @transform_8, window_bounds = array<i64: 1, 8>}, {pipeline_mode = #tpu.pipeline_mode<synchronous>, transform_indices = @transform_9, window_bounds = array<i64: 1, 8>}, {transform_indices = @transform_10, window_bounds = array<i64: 1, 256, 8>}]} {
    %c0 = arith.constant 0 : index
    %c0_0 = arith.constant 0 : index
    %c0_1 = arith.constant 0 : index
    %0 = vector.load %arg1[%c0, %c0_0, %c0_1] : memref<1x256x8xf32, #tpu.memory_space<vmem>>, vector<1x256x8xf32>
    %1 = vector.shape_cast %0 : vector<1x256x8xf32> to vector<256x8xf32>
    %c0_2 = arith.constant 0 : index
    %c0_3 = arith.constant 0 : index
    %2 = vector.load %arg2[%c0_2, %c0_3] : memref<8x32xf32, #tpu.memory_space<vmem>>, vector<8x32xf32>
    %cst = arith.constant dense<0.000000e+00> : vector<256x32xf32>
    %3 = tpu.matmul %1, %2, %cst {dimension_numbers = #tpu.dot_dimension_numbers<[1], [0], [0], [1], [0, 0, 1, 1], [], []>} : vector<256x8xf32>, vector<8x32xf32>, vector<256x32xf32> -> vector<256x32xf32>
    %c0_4 = arith.constant 0 : index
    %c0_5 = arith.constant 0 : index
    %4 = vector.load %arg3[%c0_4, %c0_5] : memref<1x32xf32, #tpu.memory_space<vmem>>, vector<1x32xf32>
    %5 = vector.broadcast %4 : vector<1x32xf32> to vector<256x32xf32>
    %6 = arith.mulf %3, %5 : vector<256x32xf32>
    %c0_6 = arith.constant 0 : index
    %c0_7 = arith.constant 0 : index
    %7 = vector.load %arg4[%c0_6, %c0_7] : memref<1x32xf32, #tpu.memory_space<vmem>>, vector<1x32xf32>
    %8 = vector.broadcast %7 : vector<1x32xf32> to vector<256x32xf32>
    %9 = arith.addf %6, %8 : vector<256x32xf32>
    %cst_8 = arith.constant 0.000000e+00 : f32
    %cst_9 = arith.constant 6.000000e+00 : f32
    %10 = vector.broadcast %cst_8 : f32 to vector<256x32xf32>
    %11 = arith.maximumf %10, %9 : vector<256x32xf32>
    %12 = vector.broadcast %cst_9 : f32 to vector<256x32xf32>
    %13 = arith.minimumf %12, %11 : vector<256x32xf32>
    %14 = vector.shape_cast %13 : vector<256x32xf32> to vector<16x16x32xf32>
    %cst_10 = arith.constant 0.000000e+00 : f32
    %15 = vector.broadcast %cst_10 : f32 to vector<1x40x32xf32>
    %c0_11 = arith.constant 0 : index
    %c0_12 = arith.constant 0 : index
    %c0_13 = arith.constant 0 : index
    %16 = vector.load %arg12[%c0_11, %c0_12, %c0_13] : memref<18x40x32xf32, #tpu.memory_space<vmem>>, vector<1x40x32xf32>
    tpu.vector_store %arg12[%c0_11, %c0_12, %c0_13], %15 {strides = array<i32>} : memref<18x40x32xf32, #tpu.memory_space<vmem>>, vector<1x40x32xf32>,
    %cst_14 = arith.constant 0.000000e+00 : f32
    %17 = vector.broadcast %cst_14 : f32 to vector<1x40x32xf32>
    %c17 = arith.constant 17 : index
    %c0_15 = arith.constant 0 : index
    %c0_16 = arith.constant 0 : index
    %18 = vector.load %arg12[%c17, %c0_15, %c0_16] : memref<18x40x32xf32, #tpu.memory_space<vmem>>, vector<1x40x32xf32>
    tpu.vector_store %arg12[%c17, %c0_15, %c0_16], %17 {strides = array<i32>} : memref<18x40x32xf32, #tpu.memory_space<vmem>>, vector<1x40x32xf32>,
    %cst_17 = arith.constant 0.000000e+00 : f32
    %19 = vector.broadcast %cst_17 : f32 to vector<18x1x32xf32>
    %c0_18 = arith.constant 0 : index
    %c15 = arith.constant 15 : index
    %c0_19 = arith.constant 0 : index
    %20 = vector.load %arg12[%c0_18, %c15, %c0_19] : memref<18x40x32xf32, #tpu.memory_space<vmem>>, vector<18x1x32xf32>
    tpu.vector_store %arg12[%c0_18, %c15, %c0_19], %19 {strides = array<i32>} : memref<18x40x32xf32, #tpu.memory_space<vmem>>, vector<18x1x32xf32>,
    %cst_20 = arith.constant 0.000000e+00 : f32
    %21 = vector.broadcast %cst_20 : f32 to vector<18x1x32xf32>
    %c0_21 = arith.constant 0 : index
    %c32 = arith.constant 32 : index
    %c0_22 = arith.constant 0 : index
    %22 = vector.load %arg12[%c0_21, %c32, %c0_22] : memref<18x40x32xf32, #tpu.memory_space<vmem>>, vector<18x1x32xf32>
    tpu.vector_store %arg12[%c0_21, %c32, %c0_22], %21 {strides = array<i32>} : memref<18x40x32xf32, #tpu.memory_space<vmem>>, vector<18x1x32xf32>,
    %c1 = arith.constant 1 : index
    %c16 = arith.constant 16 : index
    %c0_23 = arith.constant 0 : index
    %23 = vector.load %arg12[%c1, %c16, %c0_23] : memref<18x40x32xf32, #tpu.memory_space<vmem>>, vector<16x16x32xf32>
    tpu.vector_store %arg12[%c1, %c16, %c0_23], %14 {strides = array<i32>} : memref<18x40x32xf32, #tpu.memory_space<vmem>>, vector<16x16x32xf32>,
    %c0_24 = arith.constant 0 : index
    %c0_25 = arith.constant 0 : index
    %24 = vector.load %arg5[%c0_24, %c0_25] : memref<9x32xf32, #tpu.memory_space<vmem>>, vector<9x32xf32>
    %c0_26 = arith.constant 0 : index
    %c15_27 = arith.constant 15 : index
    %c0_28 = arith.constant 0 : index
    %25 = vector.load %arg12[%c0_26, %c15_27, %c0_28] : memref<18x40x32xf32, #tpu.memory_space<vmem>>, vector<16x16x32xf32>
    %26 = vector.extract_strided_slice %24 {offsets = [0, 0], sizes = [1, 32], strides = [1, 1]} : vector<9x32xf32> to vector<1x32xf32>
    %27 = vector.shape_cast %26 : vector<1x32xf32> to vector<32xf32>
    %28 = vector.shape_cast %27 : vector<32xf32> to vector<1x1x32xf32>
    %29 = vector.broadcast %28 : vector<1x1x32xf32> to vector<16x16x32xf32>
    %30 = arith.mulf %25, %29 : vector<16x16x32xf32>
    %c0_29 = arith.constant 0 : index
    %c16_30 = arith.constant 16 : index
    %c0_31 = arith.constant 0 : index
    %31 = vector.load %arg12[%c0_29, %c16_30, %c0_31] : memref<18x40x32xf32, #tpu.memory_space<vmem>>, vector<16x16x32xf32>
    %32 = vector.extract_strided_slice %24 {offsets = [1, 0], sizes = [1, 32], strides = [1, 1]} : vector<9x32xf32> to vector<1x32xf32>
    %33 = vector.shape_cast %32 : vector<1x32xf32> to vector<32xf32>
    %34 = vector.shape_cast %33 : vector<32xf32> to vector<1x1x32xf32>
    %35 = vector.broadcast %34 : vector<1x1x32xf32> to vector<16x16x32xf32>
    %36 = arith.mulf %31, %35 : vector<16x16x32xf32>
    %37 = arith.addf %30, %36 : vector<16x16x32xf32>
    %c0_32 = arith.constant 0 : index
    %c17_33 = arith.constant 17 : index
    %c0_34 = arith.constant 0 : index
    %38 = vector.load %arg12[%c0_32, %c17_33, %c0_34] : memref<18x40x32xf32, #tpu.memory_space<vmem>>, vector<16x16x32xf32>
    %39 = vector.extract_strided_slice %24 {offsets = [2, 0], sizes = [1, 32], strides = [1, 1]} : vector<9x32xf32> to vector<1x32xf32>
    %40 = vector.shape_cast %39 : vector<1x32xf32> to vector<32xf32>
    %41 = vector.shape_cast %40 : vector<32xf32> to vector<1x1x32xf32>
    %42 = vector.broadcast %41 : vector<1x1x32xf32> to vector<16x16x32xf32>
    %43 = arith.mulf %38, %42 : vector<16x16x32xf32>
    %44 = arith.addf %37, %43 : vector<16x16x32xf32>
    %c1_35 = arith.constant 1 : index
    %c15_36 = arith.constant 15 : index
    %c0_37 = arith.constant 0 : index
    %45 = vector.load %arg12[%c1_35, %c15_36, %c0_37] : memref<18x40x32xf32, #tpu.memory_space<vmem>>, vector<16x16x32xf32>
    %46 = vector.extract_strided_slice %24 {offsets = [3, 0], sizes = [1, 32], strides = [1, 1]} : vector<9x32xf32> to vector<1x32xf32>
    %47 = vector.shape_cast %46 : vector<1x32xf32> to vector<32xf32>
    %48 = vector.shape_cast %47 : vector<32xf32> to vector<1x1x32xf32>
    %49 = vector.broadcast %48 : vector<1x1x32xf32> to vector<16x16x32xf32>
    %50 = arith.mulf %45, %49 : vector<16x16x32xf32>
    %51 = arith.addf %44, %50 : vector<16x16x32xf32>
    %c1_38 = arith.constant 1 : index
    %c16_39 = arith.constant 16 : index
    %c0_40 = arith.constant 0 : index
    %52 = vector.load %arg12[%c1_38, %c16_39, %c0_40] : memref<18x40x32xf32, #tpu.memory_space<vmem>>, vector<16x16x32xf32>
    %53 = vector.extract_strided_slice %24 {offsets = [4, 0], sizes = [1, 32], strides = [1, 1]} : vector<9x32xf32> to vector<1x32xf32>
    %54 = vector.shape_cast %53 : vector<1x32xf32> to vector<32xf32>
    %55 = vector.shape_cast %54 : vector<32xf32> to vector<1x1x32xf32>
    %56 = vector.broadcast %55 : vector<1x1x32xf32> to vector<16x16x32xf32>
    %57 = arith.mulf %52, %56 : vector<16x16x32xf32>
    %58 = arith.addf %51, %57 : vector<16x16x32xf32>
    %c1_41 = arith.constant 1 : index
    %c17_42 = arith.constant 17 : index
    %c0_43 = arith.constant 0 : index
    %59 = vector.load %arg12[%c1_41, %c17_42, %c0_43] : memref<18x40x32xf32, #tpu.memory_space<vmem>>, vector<16x16x32xf32>
    %60 = vector.extract_strided_slice %24 {offsets = [5, 0], sizes = [1, 32], strides = [1, 1]} : vector<9x32xf32> to vector<1x32xf32>
    %61 = vector.shape_cast %60 : vector<1x32xf32> to vector<32xf32>
    %62 = vector.shape_cast %61 : vector<32xf32> to vector<1x1x32xf32>
    %63 = vector.broadcast %62 : vector<1x1x32xf32> to vector<16x16x32xf32>
    %64 = arith.mulf %59, %63 : vector<16x16x32xf32>
    %65 = arith.addf %58, %64 : vector<16x16x32xf32>
    %c2 = arith.constant 2 : index
    %c15_44 = arith.constant 15 : index
    %c0_45 = arith.constant 0 : index
    %66 = vector.load %arg12[%c2, %c15_44, %c0_45] : memref<18x40x32xf32, #tpu.memory_space<vmem>>, vector<16x16x32xf32>
    %67 = vector.extract_strided_slice %24 {offsets = [6, 0], sizes = [1, 32], strides = [1, 1]} : vector<9x32xf32> to vector<1x32xf32>
    %68 = vector.shape_cast %67 : vector<1x32xf32> to vector<32xf32>
    %69 = vector.shape_cast %68 : vector<32xf32> to vector<1x1x32xf32>
    %70 = vector.broadcast %69 : vector<1x1x32xf32> to vector<16x16x32xf32>
    %71 = arith.mulf %66, %70 : vector<16x16x32xf32>
    %72 = arith.addf %65, %71 : vector<16x16x32xf32>
    %c2_46 = arith.constant 2 : index
    %c16_47 = arith.constant 16 : index
    %c0_48 = arith.constant 0 : index
    %73 = vector.load %arg12[%c2_46, %c16_47, %c0_48] : memref<18x40x32xf32, #tpu.memory_space<vmem>>, vector<16x16x32xf32>
    %74 = vector.extract_strided_slice %24 {offsets = [7, 0], sizes = [1, 32], strides = [1, 1]} : vector<9x32xf32> to vector<1x32xf32>
    %75 = vector.shape_cast %74 : vector<1x32xf32> to vector<32xf32>
    %76 = vector.shape_cast %75 : vector<32xf32> to vector<1x1x32xf32>
    %77 = vector.broadcast %76 : vector<1x1x32xf32> to vector<16x16x32xf32>
    %78 = arith.mulf %73, %77 : vector<16x16x32xf32>
    %79 = arith.addf %72, %78 : vector<16x16x32xf32>
    %c2_49 = arith.constant 2 : index
    %c17_50 = arith.constant 17 : index
    %c0_51 = arith.constant 0 : index
    %80 = vector.load %arg12[%c2_49, %c17_50, %c0_51] : memref<18x40x32xf32, #tpu.memory_space<vmem>>, vector<16x16x32xf32>
    %81 = vector.extract_strided_slice %24 {offsets = [8, 0], sizes = [1, 32], strides = [1, 1]} : vector<9x32xf32> to vector<1x32xf32>
    %82 = vector.shape_cast %81 : vector<1x32xf32> to vector<32xf32>
    %83 = vector.shape_cast %82 : vector<32xf32> to vector<1x1x32xf32>
    %84 = vector.broadcast %83 : vector<1x1x32xf32> to vector<16x16x32xf32>
    %85 = arith.mulf %80, %84 : vector<16x16x32xf32>
    %86 = arith.addf %79, %85 : vector<16x16x32xf32>
    %c0_52 = arith.constant 0 : index
    %c0_53 = arith.constant 0 : index
    %87 = vector.load %arg6[%c0_52, %c0_53] : memref<1x32xf32, #tpu.memory_space<vmem>>, vector<1x32xf32>
    %88 = vector.shape_cast %87 : vector<1x32xf32> to vector<1x1x32xf32>
    %89 = vector.broadcast %88 : vector<1x1x32xf32> to vector<16x16x32xf32>
    %90 = arith.mulf %86, %89 : vector<16x16x32xf32>
    %c0_54 = arith.constant 0 : index
    %c0_55 = arith.constant 0 : index
    %91 = vector.load %arg7[%c0_54, %c0_55] : memref<1x32xf32, #tpu.memory_space<vmem>>, vector<1x32xf32>
    %92 = vector.shape_cast %91 : vector<1x32xf32> to vector<1x1x32xf32>
    %93 = vector.broadcast %92 : vector<1x1x32xf32> to vector<16x16x32xf32>
    %94 = arith.addf %90, %93 : vector<16x16x32xf32>
    %cst_56 = arith.constant 0.000000e+00 : f32
    %cst_57 = arith.constant 6.000000e+00 : f32
    %95 = vector.broadcast %cst_56 : f32 to vector<16x16x32xf32>
    %96 = arith.maximumf %95, %94 : vector<16x16x32xf32>
    %97 = vector.broadcast %cst_57 : f32 to vector<16x16x32xf32>
    %98 = arith.minimumf %97, %96 : vector<16x16x32xf32>
    %99 = vector.shape_cast %98 : vector<16x16x32xf32> to vector<256x32xf32>
    %c0_58 = arith.constant 0 : index
    %c0_59 = arith.constant 0 : index
    %100 = vector.load %arg8[%c0_58, %c0_59] : memref<32x8xf32, #tpu.memory_space<vmem>>, vector<32x8xf32>
    %cst_60 = arith.constant dense<0.000000e+00> : vector<256x8xf32>
    %101 = tpu.matmul %99, %100, %cst_60 {dimension_numbers = #tpu.dot_dimension_numbers<[1], [0], [0], [1], [0, 0, 1, 1], [], []>} : vector<256x32xf32>, vector<32x8xf32>, vector<256x8xf32> -> vector<256x8xf32>
    %c0_61 = arith.constant 0 : index
    %c0_62 = arith.constant 0 : index
    %102 = vector.load %arg9[%c0_61, %c0_62] : memref<1x8xf32, #tpu.memory_space<vmem>>, vector<1x8xf32>
    %103 = vector.broadcast %102 : vector<1x8xf32> to vector<256x8xf32>
    %104 = arith.mulf %101, %103 : vector<256x8xf32>
    %c0_63 = arith.constant 0 : index
    %c0_64 = arith.constant 0 : index
    %105 = vector.load %arg10[%c0_63, %c0_64] : memref<1x8xf32, #tpu.memory_space<vmem>>, vector<1x8xf32>
    %106 = vector.broadcast %105 : vector<1x8xf32> to vector<256x8xf32>
    %107 = arith.addf %104, %106 : vector<256x8xf32>
    %108 = arith.addf %107, %1 : vector<256x8xf32>
    %c0_65 = arith.constant 0 : index
    %c0_66 = arith.constant 0 : index
    %c0_67 = arith.constant 0 : index
    %109 = vector.load %arg11[%c0_65, %c0_66, %c0_67] : memref<1x256x8xf32, #tpu.memory_space<vmem>>, vector<1x256x8xf32>
    %110 = vector.shape_cast %109 : vector<1x256x8xf32> to vector<256x8xf32>
    %111 = vector.shape_cast %108 : vector<256x8xf32> to vector<1x256x8xf32>
    tpu.vector_store %arg11[%c0_65, %c0_66, %c0_67], %111 {strides = array<i32>} : memref<1x256x8xf32, #tpu.memory_space<vmem>>, vector<1x256x8xf32>,
    return
  }
  func.func @transform_0(%arg0: i32) -> (i32, i32, i32) {
    %c0_i32 = arith.constant 0 : i32
    %c0_i32_0 = arith.constant 0 : i32
    %c0_i32_1 = arith.constant 0 : i32
    return %arg0, %c0_i32, %c0_i32_0 : i32, i32, i32
  }
  func.func @transform_1(%arg0: i32) -> (i32, i32) {
    %c0_i32 = arith.constant 0 : i32
    %c0_i32_0 = arith.constant 0 : i32
    %c0_i32_1 = arith.constant 0 : i32
    return %c0_i32, %c0_i32_0 : i32, i32
  }
  func.func @transform_2(%arg0: i32) -> (i32, i32) {
    %c0_i32 = arith.constant 0 : i32
    %c0_i32_0 = arith.constant 0 : i32
    %c0_i32_1 = arith.constant 0 : i32
    return %c0_i32, %c0_i32_0 : i32, i32
  }
  func.func @transform_3(%arg0: i32) -> (i32, i32) {
    %c0_i32 = arith.constant 0 : i32
    %c0_i32_0 = arith.constant 0 : i32
    %c0_i32_1 = arith.constant 0 : i32
    return %c0_i32, %c0_i32_0 : i32, i32
  }
  func.func @transform_4(%arg0: i32) -> (i32, i32) {
    %c0_i32 = arith.constant 0 : i32
    %c0_i32_0 = arith.constant 0 : i32
    %c0_i32_1 = arith.constant 0 : i32
    return %c0_i32, %c0_i32_0 : i32, i32
  }
  func.func @transform_5(%arg0: i32) -> (i32, i32) {
    %c0_i32 = arith.constant 0 : i32
    %c0_i32_0 = arith.constant 0 : i32
    %c0_i32_1 = arith.constant 0 : i32
    return %c0_i32, %c0_i32_0 : i32, i32
  }
  func.func @transform_6(%arg0: i32) -> (i32, i32) {
    %c0_i32 = arith.constant 0 : i32
    %c0_i32_0 = arith.constant 0 : i32
    %c0_i32_1 = arith.constant 0 : i32
    return %c0_i32, %c0_i32_0 : i32, i32
  }
  func.func @transform_7(%arg0: i32) -> (i32, i32) {
    %c0_i32 = arith.constant 0 : i32
    %c0_i32_0 = arith.constant 0 : i32
    %c0_i32_1 = arith.constant 0 : i32
    return %c0_i32, %c0_i32_0 : i32, i32
  }
  func.func @transform_8(%arg0: i32) -> (i32, i32) {
    %c0_i32 = arith.constant 0 : i32
    %c0_i32_0 = arith.constant 0 : i32
    %c0_i32_1 = arith.constant 0 : i32
    return %c0_i32, %c0_i32_0 : i32, i32
  }
  func.func @transform_9(%arg0: i32) -> (i32, i32) {
    %c0_i32 = arith.constant 0 : i32
    %c0_i32_0 = arith.constant 0 : i32
    %c0_i32_1 = arith.constant 0 : i32
    return %c0_i32, %c0_i32_0 : i32, i32
  }
  func.func @transform_10(%arg0: i32) -> (i32, i32, i32) {
    %c0_i32 = arith.constant 0 : i32
    %c0_i32_0 = arith.constant 0 : i32
    %c0_i32_1 = arith.constant 0 : i32
    return %arg0, %c0_i32, %c0_i32_0 : i32, i32, i32
  }
}

</mosaic_0001>

<bundles_post_ra>
// kernel: tpu_custom_call.1
= control target key start
LH: loop header
LB: loop body
LE: loop exit
PB: predicated region body
PF: predicated region fallthrough
CT: control target
= control target key end

     0   :  { %s2404_s13 = smov 0   ;;  %s3526_s0 = inlined_call_operand.vmem [shape: f32[2,256,8], index: 0, kind: input, shape index: {}]   ;;  %s3527_s1 = inlined_call_operand.vmem [shape: f32[8,32], index: 1, kind: input, shape index: {}]   ;;  %s3528_s2 = inlined_call_operand.vmem [shape: f32[1,32], index: 2, kind: input, shape index: {}]   ;;  %s3529_s3 = inlined_call_operand.vmem [shape: f32[1,32], index: 3, kind: input, shape index: {}]   ;;  %s3530_s4 = inlined_call_operand.vmem [shape: f32[9,32], index: 4, kind: input, shape index: {}]   ;;  %s3531_s5 = inlined_call_operand.vmem [shape: f32[1,32], index: 5, kind: input, shape index: {}]   ;;  %s3532_s6 = inlined_call_operand.vmem [shape: f32[1,32], index: 6, kind: input, shape index: {}]   ;;  %s3533_s7 = inlined_call_operand.vmem [shape: f32[32,8], index: 7, kind: input, shape index: {}]   ;;  %s3534_s8 = inlined_call_operand.vmem [shape: f32[1,8], index: 8, kind: input, shape index: {}]   ;;  %s3535_s9 = inlined_call_operand.vmem [shape: f32[1,8], index: 9, kind: input, shape index: {}]   ;;  %s3536_s10 = inlined_call_operand.vmem [shape: f32[2,256,8], index: 10, kind: output, shape index: {}]  }
   0x1 LB: > { %s2205_s14 = sadd.s32 4294967295, %s2346_s13   ;;  %p2209_p0 = scmp.ge.s32.totalorder %s2346_s13, 1  ;;  %s2346_s13 = sphi %s2404_s13, %s20_s13  }
   0x2   : > { %p312_p1 = scmp.lt.s32.totalorder %s2346_s13, 3 }
   0x4   : > { %p313_p2 = pnand %p2209_p0, %p312_p1 }
   0x5   : > { %p350_p3 = scmp.lt.s32.totalorder (!%p313_p2), %s2205_s14, 1 }
   0x6   : > { %316 = sbr.rel (%p313_p2) target bundleno = 566 (0x236), region = 60 }
   0xb   : > { %v392_v0 = vld [vmem:[%s3527_s1] sm:$0xff]  ;;  %s3538_s14 = smov (!%p350_p3, %s2205_s14), 1  ;;  %vm393_vm0 = vcmask 64512   ;;  %vm739_vm1 = vcmask 261120   ;;  %v2348_v20 = vmov 0.0   ;;  %vm751_vm2 = vcmask 253952  }
   0xc   : > { %505 = vmatpush.msra.mxu0 %v392_v0  ;;  %2282 = vmatpush.msra.mxu3 %v392_v0  ;;  %s2280_s17 = sshll.u32 %s3538_s14, 8  ;;  %741 = vst.msk [vmem:[#allocation2 + $0x8] sm:$0xff] %vm739_vm1, %v2348_v20  ;;  %v2524_v27 = vld [vmem:[%s3528_s2] ss:$0 sm:$0xff]  ;;  %v1804_v42 = vld [vmem:[%s3533_s7 + $0x18] sm:$0xff]  ;;  %v1803_v48 = vld [vmem:[%s3533_s7 + $0x10] sm:$0xff] }
   0xd   : > { %s2423_s20 = scalar_lea.vmem %s3526_s0, %s2280_s17  ;;  %742 = vst.msk [vmem:[#allocation2 + $0x10] sm:$0xff] %vm739_vm1, %v2348_v20  ;;  %v2533_v28 = vld [vmem:[%s3529_s3] ss:$0 sm:$0xff]  ;;  %1913 = vmatpush.msra.mxu1 %v1804_v42  ;;  %2283 = vmatpush.msra.mxu2 %v1804_v42  ;;  %v1802_v52 = vld [vmem:[%s3533_s7 + $0x8] sm:$0xff]  ;;  %s3196_s25 = scalar_lea.vmem %s3536_s10, %s2280_s17 }
   0xe   : > { %v360_v1 = vld [vmem:[%s2423_s20] sm:$0xff]  ;;  %v361_v2 = vld [vmem:[%s2423_s20 + $0x8] sm:$0xff]  ;;  %v362_v3 = vld [vmem:[%s2423_s20 + $0x10] sm:$0xff]  ;;  %743 = vst.msk [vmem:[#allocation2 + $0x18] sm:$0xff] %vm739_vm1, %v2348_v20 }
   0xf   : > { %2214 = vmatmul.msk.f32.vlgmr.msra.gmra.mxu0 %vm393_vm0, %v360_v1  ;;  %v363_v4 = vld [vmem:[%s2423_s20 + $0x18] sm:$0xff]  ;;  %v364_v5 = vld [vmem:[%s2423_s20 + $0x20] sm:$0xff]  ;;  %v365_v6 = vld [vmem:[%s2423_s20 + $0x28] sm:$0xff]  ;;  %752 = vst.msk [vmem:[#allocation2 + $0xf] sm:$0x1] %vm751_vm2, %v2348_v20  ;;  %1914 = vmatpush.msra.mxu1 %v1803_v48 }
  0x10   : > { %v366_v7 = vld [vmem:[%s2423_s20 + $0x30] sm:$0xff]  ;;  %v377_v8 = vld [vmem:[%s2423_s20 + $0x88] sm:$0xff]  ;;  %v367_v9 = vld [vmem:[%s2423_s20 + $0x38] sm:$0xff]  ;;  %753 = vst.msk [vmem:[#allocation2 + $0x37] sm:$0x1] %vm751_vm2, %v2348_v20  ;;  %2284 = vmatpush.msra.mxu2 %v1803_v48 }
  0x11   : > { %2231 = vmatmul.msk.f32.vlgmr.msra.gmra.mxu3 %vm393_vm0, %v377_v8  ;;  %v378_v10 = vld [vmem:[%s2423_s20 + $0x90] sm:$0xff]  ;;  %v368_v11 = vld [vmem:[%s2423_s20 + $0x40] sm:$0xff]  ;;  %v379_v12 = vld [vmem:[%s2423_s20 + $0x98] sm:$0xff]  ;;  %754 = vst.msk [vmem:[#allocation2 + $0x5f] sm:$0x1] %vm751_vm2, %v2348_v20  ;;  %1915 = vmatpush.msra.mxu1 %v1802_v52 }
  0x12   : > { %v369_v13 = vld [vmem:[%s2423_s20 + $0x48] sm:$0xff]  ;;  %v380_v14 = vld [vmem:[%s2423_s20 + $0xa0] sm:$0xff]  ;;  %v370_v15 = vld [vmem:[%s2423_s20 + $0x50] sm:$0xff]  ;;  %744 = vst.msk [vmem:[#allocation2 + $0x20] sm:$0xff] %vm739_vm1, %v2348_v20  ;;  %2285 = vmatpush.msra.mxu2 %v1802_v52 }
  0x13   : > { %v381_v16 = vld [vmem:[%s2423_s20 + $0xa8] sm:$0xff]  ;;  %v371_v17 = vld [vmem:[%s2423_s20 + $0x58] sm:$0xff]  ;;  %v372_v18 = vld [vmem:[%s2423_s20 + $0x60] sm:$0xff]  ;;  %747 = vst.msk [vmem:[#allocation2 + $0x2b0] sm:$0xff] %vm739_vm1, %v2348_v20 }
  0x14   : > { %v382_v19 = vld [vmem:[%s2423_s20 + $0xb0] sm:$0xff]  ;;  %v373_v21 = vld [vmem:[%s2423_s20 + $0x68] sm:$0xff]  ;;  %v383_v22 = vld [vmem:[%s2423_s20 + $0xb8] sm:$0xff]  ;;  %748 = vst.msk [vmem:[#allocation2 + $0x2b8] sm:$0xff] %vm739_vm1, %v2348_v20 }
  0x15   : > { %749 = vst.msk [vmem:[#allocation2 + $0x2c0] sm:$0xff] %vm739_vm1, %v2348_v20  ;;  %v374_v23 = vld [vmem:[%s2423_s20 + $0x70] sm:$0xff]  ;;  %v384_v24 = vld [vmem:[%s2423_s20 + $0xc0] sm:$0xff]  ;;  %v375_v25 = vld [vmem:[%s2423_s20 + $0x78] sm:$0xff] }
  0x16   : > { %750 = vst.msk [vmem:[#allocation2 + $0x2c8] sm:$0xff] %vm739_vm1, %v2348_v20  ;;  %v385_v26 = vld [vmem:[%s2423_s20 + $0xc8] sm:$0xff]  ;;  %v376_v30 = vld [vmem:[%s2423_s20 + $0x80] sm:$0xff]  ;;  %v386_v31 = vld [vmem:[%s2423_s20 + $0xd0] sm:$0xff] }
  0x17   : > { %2215 = vmatmul.msk.f32.gmra.mxu0 %vm393_vm0, %v361_v2  ;;  %755 = vst.msk [vmem:[#allocation2 + $0x87] sm:$0x1] %vm751_vm2, %v2348_v20  ;;  %v387_v37 = vld [vmem:[%s2423_s20 + $0xd8] sm:$0xff]  ;;  %v2568_v39 = vld [vmem:[%s3530_s4] sm:$0xff]  ;;  %v823_v45 = vld [vmem:[#allocation2 + $0xf] sm:$0xff] }
  0x18   : > { %756 = vst.msk [vmem:[#allocation2 + $0xaf] sm:$0x1] %vm751_vm2, %v2348_v20  ;;  %v2581_v43 = vperm.slane %v2568_v39, 0  ;;  %v2584_v44 = vperm.slane %v2568_v39, 1  ;;  %v888_v46 = vld [vmem:[#allocation2 + $0x10] sm:$0xff]  ;;  %v388_v50 = vld [vmem:[%s2423_s20 + $0xe0] sm:$0xff] }
  0x19   : > { %2232 = vmatmul.msk.f32.gmra.mxu3 %vm393_vm0, %v378_v10  ;;  %757 = vst.msk [vmem:[#allocation2 + $0xd7] sm:$0x1] %vm751_vm2, %v2348_v20  ;;  %v2607_v55 = vperm.slane %v2568_v39, 2  ;;  %v824_v56 = vld [vmem:[#allocation2 + $0x17] sm:$0xff]  ;;  %v1801_v60 = vld [vmem:[%s3533_s7] sm:$0xff]  ;;  %v2621_v2 = vperm.slane %v2568_v39, 3 }
  0x1a   : > { %758 = vst.msk [vmem:[#allocation2 + $0xff] sm:$0x1] %vm751_vm2, %v2348_v20  ;;  %v856_v53 = vmul.f32 %v2581_v43, %v823_v45  ;;  %v921_v54 = vmul.f32 %v2584_v44, %v888_v46  ;;  %v889_v57 = vld [vmem:[#allocation2 + $0x18] sm:$0xff]  ;;  %1916 = vmatpush.msra.mxu1 %v1801_v60  ;;  %v857_v61 = vmul.f32 %v2581_v43, %v824_v56  ;;  %v390_v42 = vld [vmem:[%s2423_s20 + $0xf0] sm:$0xff] }
  0x1b   : > { %759 = vst.msk [vmem:[#allocation2 + $0x127] sm:$0x1] %vm751_vm2, %v2348_v20  ;;  %v985_v58 = vld [vmem:[#allocation2 + $0x11] sm:$0xff]  ;;  %v922_v62 = vmul.f32 %v2584_v44, %v889_v57  ;;  %2286 = vmatpush.msra.mxu2 %v1801_v60 }
  0x1c   : > { %760 = vst.msk [vmem:[#allocation2 + $0x14f] sm:$0x1] %vm751_vm2, %v2348_v20  ;;  %v953_v0 = vadd.f32 %v921_v54, %v856_v53  ;;  %v1018_v1 = vmul.f32 %v2607_v55, %v985_v58 }
  0x1d   : > { %761 = vst.msk [vmem:[#allocation2 + $0x177] sm:$0x1] %vm751_vm2, %v2348_v20 }
  0x1e   : > { %762 = vst.msk [vmem:[#allocation2 + $0x19f] sm:$0x1] %vm751_vm2, %v2348_v20  ;;  %v1050_v8 = vadd.f32 %v1018_v1, %v953_v0 }
  0x1f   : > { %2216 = vmatmul.msk.f32.gmra.mxu0 %vm393_vm0, %v362_v3  ;;  %763 = vst.msk [vmem:[#allocation2 + $0x1c7] sm:$0x1] %vm751_vm2, %v2348_v20 }
  0x20   : > { %764 = vst.msk [vmem:[#allocation2 + $0x1ef] sm:$0x1] %vm751_vm2, %v2348_v20 }
  0x21   : > { %2233 = vmatmul.msk.f32.gmra.mxu3 %vm393_vm0, %v379_v12  ;;  %765 = vst.msk [vmem:[#allocation2 + $0x217] sm:$0x1] %vm751_vm2, %v2348_v20 }
  0x22   : > { %766 = vst.msk [vmem:[#allocation2 + $0x23f] sm:$0x1] %vm751_vm2, %v2348_v20 }
  0x23   : > { %767 = vst.msk [vmem:[#allocation2 + $0x267] sm:$0x1] %vm751_vm2, %v2348_v20 }
  0x24   : > { %768 = vst.msk [vmem:[#allocation2 + $0x28f] sm:$0x1] %vm751_vm2, %v2348_v20 }
  0x25   : > { %771 = vst.msk [vmem:[#allocation2 + $0x48] sm:$0x1] %vm751_vm2, %v2348_v20 }
  0x26   : > { %772 = vst.msk [vmem:[#allocation2 + $0x70] sm:$0x1] %vm751_vm2, %v2348_v20 }
  0x27   : > { %2217 = vmatmul.msk.f32.gmra.mxu0 %vm393_vm0, %v363_v4  ;;  %773 = vst.msk [vmem:[#allocation2 + $0x98] sm:$0x1] %vm751_vm2, %v2348_v20 }
  0x28   : > { %774 = vst.msk [vmem:[#allocation2 + $0xc0] sm:$0x1] %vm751_vm2, %v2348_v20 }
  0x29   : > { %2234 = vmatmul.msk.f32.gmra.mxu3 %vm393_vm0, %v380_v14  ;;  %775 = vst.msk [vmem:[#allocation2 + $0xe8] sm:$0x1] %vm751_vm2, %v2348_v20  ;;  %v2629_v14 = vperm.slane %v2568_v39, 4 }
  0x2a   : > { %776 = vst.msk [vmem:[#allocation2 + $0x110] sm:$0x1] %vm751_vm2, %v2348_v20 }
  0x2b   : > { %777 = vst.msk [vmem:[#allocation2 + $0x138] sm:$0x1] %vm751_vm2, %v2348_v20 }
  0x2c   : > { %778 = vst.msk [vmem:[#allocation2 + $0x160] sm:$0x1] %vm751_vm2, %v2348_v20 }
  0x2d   : > { %779 = vst.msk [vmem:[#allocation2 + $0x188] sm:$0x1] %vm751_vm2, %v2348_v20 }
  0x2e   : > { %780 = vst.msk [vmem:[#allocation2 + $0x1b0] sm:$0x1] %vm751_vm2, %v2348_v20 }
  0x2f   : > { %2218 = vmatmul.msk.f32.gmra.mxu0 %vm393_vm0, %v364_v5  ;;  %781 = vst.msk [vmem:[#allocation2 + $0x1d8] sm:$0x1] %vm751_vm2, %v2348_v20 }
  0x30   : > { %782 = vst.msk [vmem:[#allocation2 + $0x200] sm:$0x1] %vm751_vm2, %v2348_v20 }
  0x31   : > { %2235 = vmatmul.msk.f32.gmra.mxu3 %vm393_vm0, %v381_v16  ;;  %783 = vst.msk [vmem:[#allocation2 + $0x228] sm:$0x1] %vm751_vm2, %v2348_v20  ;;  %v389_v16 = vld [vmem:[%s2423_s20 + $0xe8] sm:$0xff] }
  0x32   : > { %784 = vst.msk [vmem:[#allocation2 + $0x250] sm:$0x1] %vm751_vm2, %v2348_v20 }
  0x33   : > { %785 = vst.msk [vmem:[#allocation2 + $0x278] sm:$0x1] %vm751_vm2, %v2348_v20 }
  0x34   : > { %786 = vst.msk [vmem:[#allocation2 + $0x2a0] sm:$0x1] %vm751_vm2, %v2348_v20 }
  0x35   : > { %769 = vst.msk [vmem:[#allocation2 + $0x2b7] sm:$0x1] %vm751_vm2, %v2348_v20 }
  0x36   : > { %770 = vst.msk [vmem:[#allocation2 + $0x20] sm:$0x1] %vm751_vm2, %v2348_v20 }
  0x37   : > { %2219 = vmatmul.msk.f32.gmra.mxu0 %vm393_vm0, %v365_v6  ;;  %787 = vst.msk [vmem:[#allocation2 + $0x2c8] sm:$0x1] %vm751_vm2, %v2348_v20  ;;  %v954_v6 = vadd.f32 %v922_v62, %v857_v61 }
  0x39   : > { %2236 = vmatmul.msk.f32.gmra.mxu3 %vm393_vm0, %v382_v19 }
  0x3d   : > { %v986_v10 = vld [vmem:[#allocation2 + $0x19] sm:$0xff] }
  0x3e   : > { %v1019_v12 = vmul.f32 %v2607_v55, %v986_v10 }
  0x3f   : > { %2220 = vmatmul.msk.f32.gmra.mxu0 %vm393_vm0, %v366_v7 }
  0x40   : > { %v1051_v19 = vadd.f32 %v1019_v12, %v954_v6  ;;  %v2687_v12 = vld [vmem:[%s3532_s6] ss:$0 sm:$0xff] }
  0x41   : > { %2237 = vmatmul.msk.f32.gmra.mxu3 %vm393_vm0, %v383_v22 }
  0x47   : > { %2221 = vmatmul.msk.f32.gmra.mxu0 %vm393_vm0, %v367_v9 }
  0x49   : > { %2238 = vmatmul.msk.f32.gmra.mxu3 %vm393_vm0, %v384_v24 }
  0x4f   : > { %2222 = vmatmul.msk.f32.gmra.mxu0 %vm393_vm0, %v368_v11 }
  0x51   : > { %2239 = vmatmul.msk.f32.gmra.mxu3 %vm393_vm0, %v385_v26 }
  0x57   : > { %2223 = vmatmul.msk.f32.gmra.mxu0 %vm393_vm0, %v369_v13 }
  0x59   : > { %2240 = vmatmul.msk.f32.gmra.mxu3 %vm393_vm0, %v386_v31 }
  0x5f   : > { %2224 = vmatmul.msk.f32.gmra.mxu0 %vm393_vm0, %v370_v15  ;;  %v2632_v15 = vperm.slane %v2568_v39, 5 }
  0x61   : > { %2241 = vmatmul.msk.f32.gmra.mxu3 %vm393_vm0, %v387_v37 }
  0x67   : > { %2225 = vmatmul.msk.f32.gmra.mxu0 %vm393_vm0, %v371_v17 }
  0x69   : > { %2242 = vmatmul.msk.f32.gmra.mxu3 %vm393_vm0, %v388_v50 }
  0x6f   : > { %2226 = vmatmul.msk.f32.gmra.mxu0 %vm393_vm0, %v372_v18 }
  0x71   : > { %2243 = vmatmul.msk.f32.gmra.mxu3 %vm393_vm0, %v389_v16 }
  0x77   : > { %2227 = vmatmul.msk.f32.gmra.mxu0 %vm393_vm0, %v373_v21 }
  0x79   : > { %2244 = vmatmul.msk.f32.gmra.mxu3 %vm393_vm0, %v390_v42 }
  0x7f   : > { %2228 = vmatmul.msk.f32.gmra.mxu0 %vm393_vm0, %v374_v23  ;;  %v2638_v23 = vperm.slane %v2568_v39, 6 }
  0x87   : > { %2229 = vmatmul.msk.f32.gmra.mxu0 %vm393_vm0, %v375_v25 }
  0x8c   : > { %v507_v29 = vpop.f32.mrf.mxu0 }
  0x8d   : > { %v607_v32 = vmul.f32 %v2524_v27, %v507_v29 }
  0x8f   : > { %v643_v33 = vadd.f32 %v2533_v28, %v607_v32  ;;  %2230 = vmatmul.msk.f32.gmra.mxu0 %vm393_vm0, %v376_v30 }
  0x91   : > { %v675_v34 = vmax.f32 %v643_v33, 0.0 }
  0x93   : > { %v707_v35 = vmin.f32 %v675_v34, 6.0 }
  0x94   : > { %v510_v36 = vpop.f32.mrf.mxu0 }
  0x95   : > { %789 = vst.msk [vmem:[#allocation2 + $0x38] sm:$0xff] %vm739_vm1, %v707_v35  ;;  %v608_v38 = vmul.f32 %v2524_v27, %v510_v36 }
  0x97   : > { %v644_v40 = vadd.f32 %v2533_v28, %v608_v38 }
  0x99   : > { %v676_v41 = vmax.f32 %v644_v40, 0.0  ;;  %v2651_v40 = vperm.slane %v2568_v39, 7 }
  0x9b   : > { %v708_v47 = vmin.f32 %v676_v41, 6.0 }
  0x9c   : > { %v513_v49 = vpop.f32.mrf.mxu0  ;;  %v1082_v3 = vld [vmem:[#allocation2 + $0x37] sm:$0xff] }
  0x9d   : > { %790 = vst.msk [vmem:[#allocation2 + $0x40] sm:$0xff] %vm739_vm1, %v708_v47  ;;  %v609_v51 = vmul.f32 %v2524_v27, %v513_v49  ;;  %v1115_v9 = vmul.f32 %v2621_v2, %v1082_v3  ;;  %v1179_v17 = vld [vmem:[#allocation2 + $0x38] sm:$0xff]  ;;  %v858_v47 = vmul.f32 %v1082_v3, %v2581_v43 }
  0x9e   : > { %v1212_v25 = vmul.f32 %v2629_v14, %v1179_v17  ;;  %v923_v48 = vmul.f32 %v1179_v17, %v2584_v44  ;;  %v391_v17 = vld [vmem:[%s2423_s20 + $0xf8] sm:$0xff] }
  0x9f   : > { %v645_v59 = vadd.f32 %v2533_v28, %v609_v51  ;;  %v1147_v22 = vadd.f32 %v1115_v9, %v1050_v8  ;;  %v2662_v51 = vld [vmem:[%s3530_s4 + $0x8] ss:$0 sm:$0xff]  ;;  %2245 = vmatmul.msk.f32.gmra.mxu3 %vm393_vm0, %v391_v17 }
  0xa1   : > { %v677_v63 = vmax.f32 %v645_v59, 0.0  ;;  %v1244_v34 = vadd.f32 %v1212_v25, %v1147_v22 }
  0xa3   : > { %v709_v4 = vmin.f32 %v677_v63, 6.0  ;;  %v955_v63 = vadd.f32 %v923_v48, %v858_v47 }
  0xa4   : > { %v516_v5 = vpop.f32.mrf.mxu0  ;;  %v1083_v11 = vld [vmem:[#allocation2 + $0x3f] sm:$0xff] }
  0xa5   : > { %791 = vst.msk [vmem:[#allocation2 + $0x60] sm:$0xff] %vm739_vm1, %v709_v4  ;;  %v610_v7 = vmul.f32 %v2524_v27, %v516_v5  ;;  %v1276_v18 = vld [vmem:[#allocation2 + $0x39] sm:$0xff]  ;;  %v1116_v20 = vmul.f32 %v2621_v2, %v1083_v11  ;;  %v1277_v41 = vld [vmem:[#allocation2 + $0x41] sm:$0xff]  ;;  %v859_v53 = vmul.f32 %v1083_v11, %v2581_v43 }
  0xa6   : > { %v1309_v26 = vmul.f32 %v2632_v15, %v1276_v18  ;;  %v1180_v29 = vld [vmem:[#allocation2 + $0x40] sm:$0xff]  ;;  %v1310_v39 = vmul.f32 %v2632_v15, %v1277_v41  ;;  %v1020_v52 = vmul.f32 %v1276_v18, %v2607_v55 }
  0xa7   : > { %v646_v13 = vadd.f32 %v2533_v28, %v610_v7  ;;  %v1148_v32 = vadd.f32 %v1116_v20, %v1051_v19  ;;  %v1213_v36 = vmul.f32 %v2629_v14, %v1180_v29  ;;  %v924_v54 = vmul.f32 %v1180_v29, %v2584_v44  ;;  %v2678_v5 = vld [vmem:[%s3531_s5] ss:$0 sm:$0xff] }
  0xa8   : > { %v1341_v38 = vadd.f32 %v1309_v26, %v1244_v34  ;;  %v1052_v8 = vadd.f32 %v1020_v52, %v955_v63  ;;  %v1021_v19 = vmul.f32 %v1277_v41, %v2607_v55 }
  0xa9   : > { %v678_v21 = vmax.f32 %v646_v13, 0.0  ;;  %v1245_v46 = vadd.f32 %v1213_v36, %v1148_v32  ;;  %v956_v9 = vadd.f32 %v924_v54, %v859_v53 }
  0xab   : > { %v710_v24 = vmin.f32 %v678_v21, 6.0  ;;  %v1342_v60 = vadd.f32 %v1310_v39, %v1245_v46  ;;  %v1053_v29 = vadd.f32 %v1021_v19, %v956_v9 }
  0xac   : > { %v519_v30 = vpop.f32.mrf.mxu0  ;;  %v2642_v31 = vld [vmem:[#allocation2 + $0x5f] sm:$0xff] }
  0xad   : > { %792 = vst.msk [vmem:[#allocation2 + $0x68] sm:$0xff] %vm739_vm1, %v710_v24  ;;  %v611_v33 = vmul.f32 %v2524_v27, %v519_v30  ;;  %v1407_v35 = vmul.f32 %v2638_v23, %v2642_v31  ;;  %v2654_v45 = vld [vmem:[#allocation2 + $0x60] sm:$0xff]  ;;  %v1117_v0 = vmul.f32 %v2642_v31, %v2621_v2 }
  0xae   : > { %v1504_v57 = vmul.f32 %v2651_v40, %v2654_v45  ;;  %v1214_v26 = vmul.f32 %v2654_v45, %v2629_v14 }
  0xaf   : > { %v647_v37 = vadd.f32 %v2533_v28, %v611_v33  ;;  %v1439_v50 = vadd.f32 %v1407_v35, %v1341_v38  ;;  %v1149_v18 = vadd.f32 %v1117_v0, %v1052_v8 }
  0xb1   : > { %v679_v49 = vmax.f32 %v647_v37, 0.0  ;;  %v1536_v3 = vadd.f32 %v1504_v57, %v1439_v50  ;;  %v1246_v36 = vadd.f32 %v1214_v26, %v1149_v18  ;;  %v925_v57 = vmul.f32 %v2654_v45, %v2584_v44 }
  0xb3   : > { %v711_v56 = vmin.f32 %v679_v49, 6.0 }
  0xb4   : > { %v522_v58 = vpop.f32.mrf.mxu0  ;;  %v1568_v59 = vld [vmem:[#allocation2 + $0x61] sm:$0xff]  ;;  %v2681_v7 = vld [vmem:[#allocation2 + $0x69] sm:$0xff] }
  0xb5   : > { %v1375_v61 = vld [vmem:[#allocation2 + $0x67] sm:$0xff]  ;;  %793 = vst.msk [vmem:[#allocation2 + $0x88] sm:$0xff] %vm739_vm1, %v711_v56  ;;  %v612_v1 = vmul.f32 %v2524_v27, %v522_v58  ;;  %v1601_v4 = vmul.f32 %v2662_v51, %v1568_v59  ;;  %v1602_v25 = vmul.f32 %v2662_v51, %v2681_v7  ;;  %v1311_v34 = vmul.f32 %v1568_v59, %v2632_v15 }
  0xb6   : > { %v1472_v62 = vld [vmem:[#allocation2 + $0x68] sm:$0xff]  ;;  %v1408_v6 = vmul.f32 %v2638_v23, %v1375_v61  ;;  %v1118_v20 = vmul.f32 %v1375_v61, %v2621_v2  ;;  %v860_v56 = vmul.f32 %v2642_v31, %v2581_v43  ;;  %v1312_v63 = vmul.f32 %v2681_v7, %v2632_v15 }
  0xb7   : > { %v648_v10 = vadd.f32 %v2533_v28, %v612_v1  ;;  %v1633_v11 = vadd.f32 %v1601_v4, %v1536_v3  ;;  %v1505_v16 = vmul.f32 %v2651_v40, %v1472_v62  ;;  %v1215_v48 = vmul.f32 %v1472_v62, %v2629_v14 }
  0xb8   : > { %v1440_v13 = vadd.f32 %v1408_v6, %v1342_v60  ;;  %v1150_v38 = vadd.f32 %v1118_v20, %v1053_v29  ;;  %v1343_v52 = vadd.f32 %v1311_v34, %v1246_v36  ;;  %v1022_v1 = vmul.f32 %v1568_v59, %v2607_v55 }
  0xb9   : > { %v680_v21 = vmax.f32 %v648_v10, 0.0  ;;  %v1669_v22 = vmul.f32 %v2678_v5, %v1633_v11  ;;  %v861_v3 = vmul.f32 %v1375_v61, %v2581_v43  ;;  %v926_v4 = vmul.f32 %v1472_v62, %v2584_v44 }
  0xba   : > { %v1537_v24 = vadd.f32 %v1505_v16, %v1440_v13  ;;  %v1247_v54 = vadd.f32 %v1215_v48, %v1150_v38  ;;  %v957_v13 = vadd.f32 %v925_v57, %v860_v56  ;;  %v558_v48 = vpop.f32.mrf.mxu3 }
  0xbb   : > { %v712_v30 = vmin.f32 %v680_v21, 6.0  ;;  %v1705_v32 = vadd.f32 %v2687_v12, %v1669_v22  ;;  %v958_v21 = vadd.f32 %v926_v4, %v861_v3 }
  0xbc   : > { %v1634_v33 = vadd.f32 %v1602_v25, %v1537_v24  ;;  %v525_v35 = vpop.f32.mrf.mxu0  ;;  %v2701_v37 = vld [vmem:[#allocation2 + $0x87] sm:$0xff]  ;;  %v1344_v45 = vadd.f32 %v1312_v63, %v1247_v54  ;;  %v1054_v20 = vadd.f32 %v1022_v1, %v957_v13  ;;  %v624_v1 = vmul.f32 %v2524_v27, %v558_v48 }
  0xbd   : > { %794 = vst.msk [vmem:[#allocation2 + $0x90] sm:$0xff] %vm739_vm1, %v712_v30  ;;  %v613_v41 = vmul.f32 %v2524_v27, %v525_v35  ;;  %v1737_v42 = vmax.f32 %v1705_v32, 0.0  ;;  %v1409_v47 = vmul.f32 %v2638_v23, %v2701_v37  ;;  %v1473_v53 = vld [vmem:[#allocation2 + $0x88] sm:$0xff]  ;;  %v1119_v16 = vmul.f32 %v2701_v37, %v2621_v2 }
  0xbe   : > { %v1670_v46 = vmul.f32 %v2678_v5, %v1634_v33  ;;  %v1506_v31 = vmul.f32 %v2651_v40, %v1473_v53  ;;  %v1023_v30 = vmul.f32 %v2681_v7, %v2607_v55  ;;  %v1216_v38 = vmul.f32 %v1473_v53, %v2629_v14 }
  0xbf   : > { %v649_v49 = vadd.f32 %v2533_v28, %v613_v41  ;;  %v1769_v50 = vmin.f32 %v1737_v42, 6.0  ;;  %v1441_v60 = vadd.f32 %v1409_v47, %v1343_v52  ;;  %v1151_v29 = vadd.f32 %v1119_v16, %v1054_v20 }
  0xc0   : > { %v1706_v39 = vadd.f32 %v2687_v12, %v1670_v46  ;;  %v1055_v42 = vadd.f32 %v1023_v30, %v958_v21  ;;  %v862_v54 = vmul.f32 %v2701_v37, %v2581_v43  ;;  %v927_v56 = vmul.f32 %v1473_v53, %v2584_v44 }
  0xc1   : > { %v681_v58 = vmax.f32 %v649_v49, 0.0  ;;  %2246 = vmatmul.msk.f32.vlgmr.msra.gmra.mxu1 %vm739_vm1, %v1769_v50  ;;  %v1538_v17 = vadd.f32 %v1506_v31, %v1441_v60  ;;  %v1248_v50 = vadd.f32 %v1216_v38, %v1151_v29 }
  0xc2   : > { %v1738_v0 = vmax.f32 %v1706_v39, 0.0  ;;  %v561_v38 = vpop.f32.mrf.mxu3 }
  0xc3   : > { %v713_v6 = vmin.f32 %v681_v58, 6.0 }
  0xc4   : > { %v528_v8 = vpop.f32.mrf.mxu0  ;;  %v1570_v9 = vld [vmem:[#allocation2 + $0x89] sm:$0xff]  ;;  %v1770_v18 = vmin.f32 %v1738_v0, 6.0  ;;  %v2728_v19 = vld [vmem:[#allocation2 + $0x91] sm:$0xff] }
  0xc5   : > { %v1377_v10 = vld [vmem:[#allocation2 + $0x8f] sm:$0xff]  ;;  %795 = vst.msk [vmem:[#allocation2 + $0xb0] sm:$0xff] %vm739_vm1, %v713_v6  ;;  %v614_v59 = vmul.f32 %v2524_v27, %v528_v8  ;;  %v1603_v61 = vmul.f32 %v2662_v51, %v1570_v9  ;;  %v1604_v36 = vmul.f32 %v2662_v51, %v2728_v19  ;;  %v1313_v41 = vmul.f32 %v1570_v9, %v2632_v15 }
  0xc6   : > { %v1474_v11 = vld [vmem:[#allocation2 + $0x90] sm:$0xff]  ;;  %v1410_v62 = vmul.f32 %v2638_v23, %v1377_v10  ;;  %v1120_v32 = vmul.f32 %v1377_v10, %v2621_v2  ;;  %v1024_v6 = vmul.f32 %v1570_v9, %v2607_v55  ;;  %v660_v8 = vadd.f32 %v2533_v28, %v624_v1 }
  0xc7   : > { %v650_v22 = vadd.f32 %v2533_v28, %v614_v59  ;;  %v1635_v24 = vadd.f32 %v1603_v61, %v1538_v17  ;;  %v1507_v26 = vmul.f32 %v2651_v40, %v1474_v11  ;;  %v1345_v0 = vadd.f32 %v1313_v41, %v1248_v50 }
  0xc8   : > { %v1442_v25 = vadd.f32 %v1410_v62, %v1344_v45  ;;  %v1152_v52 = vadd.f32 %v1120_v32, %v1055_v42  ;;  %v1217_v3 = vmul.f32 %v1474_v11, %v2629_v14  ;;  %v863_v13 = vmul.f32 %v1377_v10, %v2581_v43 }
  0xc9   : > { %v682_v33 = vmax.f32 %v650_v22, 0.0  ;;  %2247 = vmatmul.msk.f32.gmra.mxu1 %vm739_vm1, %v1770_v18  ;;  %v1671_v34 = vmul.f32 %v2678_v5, %v1635_v24  ;;  %v928_v16 = vmul.f32 %v1474_v11, %v2584_v44  ;;  %v959_v61 = vadd.f32 %v927_v56, %v862_v54 }
  0xca   : > { %v1539_v35 = vadd.f32 %v1507_v26, %v1442_v25  ;;  %v1249_v45 = vadd.f32 %v1217_v3, %v1152_v52  ;;  %v692_v18 = vmax.f32 %v660_v8, 0.0  ;;  %v1314_v20 = vmul.f32 %v2728_v19, %v2632_v15 }
  0xcb   : > { %v714_v46 = vmin.f32 %v682_v33, 6.0  ;;  %v1707_v47 = vadd.f32 %v2687_v12, %v1671_v34  ;;  %v1056_v22 = vadd.f32 %v1024_v6, %v959_v61  ;;  %v960_v32 = vadd.f32 %v928_v16, %v863_v13 }
  0xcc   : > { %v1636_v7 = vadd.f32 %v1604_v36, %v1539_v35  ;;  %v531_v49 = vpop.f32.mrf.mxu0  ;;  %v2742_v39 = vld [vmem:[#allocation2 + $0xaf] sm:$0xff]  ;;  %v724_v26 = vmin.f32 %v692_v18, 6.0  ;;  %v1346_v10 = vadd.f32 %v1314_v20, %v1249_v45 }
  0xcd   : > { %796 = vst.msk [vmem:[#allocation2 + $0xb8] sm:$0xff] %vm739_vm1, %v714_v46  ;;  %v615_v57 = vmul.f32 %v2524_v27, %v531_v49  ;;  %v1739_v58 = vmax.f32 %v1707_v47, 0.0  ;;  %v1411_v63 = vmul.f32 %v2638_v23, %v2742_v39  ;;  %v1475_v31 = vld [vmem:[#allocation2 + $0xb0] sm:$0xff]  ;;  %v1121_v30 = vmul.f32 %v2742_v39, %v2621_v2 }
  0xce   : > { %v1672_v60 = vmul.f32 %v2678_v5, %v1636_v7  ;;  %v1508_v9 = vmul.f32 %v2651_v40, %v1475_v31  ;;  %806 = vst.msk [vmem:[#allocation2 + $0x180] sm:$0xff] %vm739_vm1, %v724_v26  ;;  %v625_v47 = vmul.f32 %v2524_v27, %v561_v38  ;;  %v1025_v7 = vmul.f32 %v2728_v19, %v2607_v55 }
  0xcf   : > { %v651_v4 = vadd.f32 %v2533_v28, %v615_v57  ;;  %v1771_v37 = vmin.f32 %v1739_v58, 6.0  ;;  %v1443_v17 = vadd.f32 %v1411_v63, %v1345_v0  ;;  %v1153_v56 = vadd.f32 %v1121_v30, %v1056_v22 }
  0xd0   : > { %v1708_v53 = vadd.f32 %v2687_v12, %v1672_v60  ;;  %v661_v54 = vadd.f32 %v2533_v28, %v625_v47  ;;  %v1057_v57 = vadd.f32 %v1025_v7, %v960_v32  ;;  %v1218_v1 = vmul.f32 %v1475_v31, %v2629_v14 }
  0xd1   : > { %v683_v59 = vmax.f32 %v651_v4, 0.0  ;;  %2248 = vmatmul.msk.f32.gmra.mxu1 %vm739_vm1, %v1771_v37  ;;  %v1540_v34 = vadd.f32 %v1508_v9, %v1443_v17  ;;  %v864_v4 = vmul.f32 %v2742_v39, %v2581_v43  ;;  %v929_v61 = vmul.f32 %v1475_v31, %v2584_v44 }
  0xd2   : > { %v1740_v62 = vmax.f32 %v1708_v53, 0.0  ;;  %v693_v19 = vmax.f32 %v661_v54, 0.0  ;;  %v1250_v16 = vadd.f32 %v1218_v1, %v1153_v56 }
  0xd3   : > { %v715_v21 = vmin.f32 %v683_v59, 6.0 }
  0xd4   : > { %v534_v24 = vpop.f32.mrf.mxu0  ;;  %v1572_v25 = vld [vmem:[#allocation2 + $0xb1] sm:$0xff]  ;;  %v1772_v41 = vmin.f32 %v1740_v62, 6.0  ;;  %v2772_v46 = vld [vmem:[#allocation2 + $0xb9] sm:$0xff]  ;;  %v725_v13 = vmin.f32 %v693_v19, 6.0 }
  0xd5   : > { %v1379_v29 = vld [vmem:[#allocation2 + $0xb7] sm:$0xff]  ;;  %797 = vst.msk [vmem:[#allocation2 + $0xd8] sm:$0xff] %vm739_vm1, %v715_v21  ;;  %v616_v33 = vmul.f32 %v2524_v27, %v534_v24  ;;  %v1605_v35 = vmul.f32 %v2662_v51, %v1572_v25  ;;  %v1606_v0 = vmul.f32 %v2662_v51, %v2772_v46  ;;  %v1315_v3 = vmul.f32 %v1572_v25, %v2632_v15  ;;  %v564_v21 = vpop.f32.mrf.mxu3 }
  0xd6   : > { %v1476_v11 = vld [vmem:[#allocation2 + $0xb8] sm:$0xff]  ;;  %v1412_v36 = vmul.f32 %v2638_v23, %v1379_v29  ;;  %v1122_v52 = vmul.f32 %v1379_v29, %v2621_v2  ;;  %807 = vst.msk [vmem:[#allocation2 + $0x1a0] sm:$0xff] %vm739_vm1, %v725_v13  ;;  %v626_v22 = vmul.f32 %v2524_v27, %v564_v21  ;;  %v1026_v24 = vmul.f32 %v1572_v25, %v2607_v55 }
  0xd7   : > { %v1509_v42 = vmul.f32 %v2651_v40, %v1476_v11  ;;  %v652_v48 = vadd.f32 %v2533_v28, %v616_v33  ;;  %v1637_v49 = vadd.f32 %v1605_v35, %v1540_v34  ;;  %v1219_v17 = vmul.f32 %v1476_v11, %v2629_v14 }
  0xd8   : > { %v1444_v50 = vadd.f32 %v1412_v36, %v1346_v10  ;;  %v1154_v8 = vadd.f32 %v1122_v52, %v1057_v57  ;;  %v1347_v9 = vadd.f32 %v1315_v3, %v1250_v16  ;;  %v662_v33 = vadd.f32 %v2533_v28, %v626_v22 }
  0xd9   : > { %v684_v58 = vmax.f32 %v652_v48, 0.0  ;;  %2249 = vmatmul.msk.f32.gmra.mxu1 %vm739_vm1, %v1772_v41  ;;  %v1673_v60 = vmul.f32 %v2678_v5, %v1637_v49  ;;  %v865_v34 = vmul.f32 %v1379_v29, %v2581_v43  ;;  %v930_v35 = vmul.f32 %v1476_v11, %v2584_v44 }
  0xda   : > { %v1541_v63 = vadd.f32 %v1509_v42, %v1444_v50  ;;  %v1251_v30 = vadd.f32 %v1219_v17, %v1154_v8  ;;  %v1316_v25 = vmul.f32 %v2772_v46, %v2632_v15  ;;  %v961_v41 = vadd.f32 %v929_v61, %v864_v4 }
  0xdb   : > { %v716_v37 = vmin.f32 %v684_v58, 6.0  ;;  %v1709_v53 = vadd.f32 %v2687_v12, %v1673_v60  ;;  %v694_v47 = vmax.f32 %v662_v33, 0.0  ;;  %v962_v60 = vadd.f32 %v930_v35, %v865_v34 }
  0xdc   : > { %v1638_v6 = vadd.f32 %v1606_v0, %v1541_v63  ;;  %v537_v45 = vpop.f32.mrf.mxu0  ;;  %v1380_v59 = vld [vmem:[#allocation2 + $0xd7] sm:$0xff]  ;;  %v1348_v50 = vadd.f32 %v1316_v25, %v1251_v30  ;;  %v1058_v52 = vadd.f32 %v1026_v24, %v961_v41  ;;  %v1027_v63 = vmul.f32 %v2772_v46, %v2607_v55 }
  0xdd   : > { %798 = vst.msk [vmem:[#allocation2 + $0xe0] sm:$0xff] %vm739_vm1, %v716_v37  ;;  %v617_v62 = vmul.f32 %v2524_v27, %v537_v45  ;;  %v1741_v18 = vmax.f32 %v1709_v53, 0.0  ;;  %v1413_v20 = vmul.f32 %v2638_v23, %v1380_v59  ;;  %v1477_v32 = vld [vmem:[#allocation2 + $0xd8] sm:$0xff]  ;;  %v1123_v7 = vmul.f32 %v1380_v59, %v2621_v2  ;;  %v567_v4 = vpop.f32.mrf.mxu3 }
  0xde   : > { %v1674_v39 = vmul.f32 %v2678_v5, %v1638_v6  ;;  %v1510_v49 = vmul.f32 %v2651_v40, %v1477_v32  ;;  %v726_v11 = vmin.f32 %v694_v47, 6.0  ;;  %v1220_v58 = vmul.f32 %v1477_v32, %v2629_v14 }
  0xdf   : > { %v653_v26 = vadd.f32 %v2533_v28, %v617_v62  ;;  %v1773_v31 = vmin.f32 %v1741_v18, 6.0  ;;  %v1445_v38 = vadd.f32 %v1413_v20, %v1347_v9  ;;  %v627_v8 = vmul.f32 %v2524_v27, %v567_v4 }
  0xe0   : > { %v1710_v10 = vadd.f32 %v2687_v12, %v1674_v39  ;;  %808 = vst.msk [vmem:[#allocation2 + $0x1a8] sm:$0xff] %vm739_vm1, %v726_v11  ;;  %v1155_v45 = vadd.f32 %v1123_v7, %v1058_v52  ;;  %v1059_v62 = vadd.f32 %v1027_v63, %v962_v60  ;;  %v866_v18 = vmul.f32 %v1380_v59, %v2581_v43 }
  0xe1   : > { %v685_v36 = vmax.f32 %v653_v26, 0.0  ;;  %2250 = vmatmul.msk.f32.gmra.mxu1 %vm739_vm1, %v1773_v31  ;;  %v1542_v19 = vadd.f32 %v1510_v49, %v1445_v38  ;;  %v663_v61 = vadd.f32 %v2533_v28, %v627_v8  ;;  %v931_v39 = vmul.f32 %v1477_v32, %v2584_v44 }
  0xe2   : > { %v1742_v42 = vmax.f32 %v1710_v10, 0.0  ;;  %v1252_v26 = vadd.f32 %v1220_v58, %v1155_v45 }
  0xe3   : > { %v717_v48 = vmin.f32 %v685_v36, 6.0  ;;  %v695_v24 = vmax.f32 %v663_v61, 0.0 }
  0xe4   : > { %v540_v29 = vpop.f32.mrf.mxu0  ;;  %v1574_v54 = vld [vmem:[#allocation2 + $0xd9] sm:$0xff]  ;;  %v1774_v37 = vmin.f32 %v1742_v42, 6.0  ;;  %v1575_v6 = vld [vmem:[#allocation2 + $0xe1] sm:$0xff] }
  0xe5   : > { %v1381_v56 = vld [vmem:[#allocation2 + $0xdf] sm:$0xff]  ;;  %799 = vst.msk [vmem:[#allocation2 + $0x100] sm:$0xff] %vm739_vm1, %v717_v48  ;;  %v618_v0 = vmul.f32 %v2524_v27, %v540_v29  ;;  %v1607_v1 = vmul.f32 %v2662_v51, %v1574_v54  ;;  %v1608_v22 = vmul.f32 %v2662_v51, %v1575_v6  ;;  %v1317_v31 = vmul.f32 %v1574_v54, %v2632_v15  ;;  %v570_v49 = vpop.f32.mrf.mxu3 }
  0xe6   : > { %v1478_v57 = vld [vmem:[#allocation2 + $0xe0] sm:$0xff]  ;;  %v1414_v3 = vmul.f32 %v2638_v23, %v1381_v56  ;;  %v1124_v17 = vmul.f32 %v1381_v56, %v2621_v2  ;;  %v727_v35 = vmin.f32 %v695_v24, 6.0  ;;  %v1028_v38 = vmul.f32 %v1574_v54, %v2607_v55 }
  0xe7   : > { %v1511_v53 = vmul.f32 %v2651_v40, %v1478_v57  ;;  %v654_v46 = vadd.f32 %v2533_v28, %v618_v0  ;;  %v1639_v13 = vadd.f32 %v1607_v1, %v1542_v19  ;;  %v1221_v10 = vmul.f32 %v1478_v57, %v2629_v14 }
  0xe8   : > { %v1446_v16 = vadd.f32 %v1414_v3, %v1348_v50  ;;  %v1156_v34 = vadd.f32 %v1124_v17, %v1059_v62  ;;  %v867_v25 = vmul.f32 %v1381_v56, %v2581_v43  ;;  %v932_v41 = vmul.f32 %v1478_v57, %v2584_v44  ;;  %809 = vst.msk [vmem:[#allocation2 + $0x1c8] sm:$0xff] %vm739_vm1, %v727_v35 }
  0xe9   : > { %v686_v20 = vmax.f32 %v654_v46, 0.0  ;;  %2251 = vmatmul.msk.f32.gmra.mxu1 %vm739_vm1, %v1774_v37  ;;  %v1675_v21 = vmul.f32 %v2678_v5, %v1639_v13  ;;  %v1349_v50 = vadd.f32 %v1317_v31, %v1252_v26  ;;  %v628_v52 = vmul.f32 %v2524_v27, %v570_v49 }
  0xea   : > { %v1543_v9 = vadd.f32 %v1511_v53, %v1446_v16  ;;  %v963_v29 = vadd.f32 %v931_v39, %v866_v18  ;;  %v1253_v60 = vadd.f32 %v1221_v10, %v1156_v34  ;;  %v964_v1 = vadd.f32 %v932_v41, %v867_v25 }
  0xeb   : > { %v718_v30 = vmin.f32 %v686_v20, 6.0  ;;  %v1711_v33 = vadd.f32 %v2687_v12, %v1675_v21  ;;  %v664_v0 = vadd.f32 %v2533_v28, %v628_v52  ;;  %v1318_v4 = vmul.f32 %v1575_v6, %v2632_v15 }
  0xec   : > { %v1640_v59 = vadd.f32 %v1608_v22, %v1543_v9  ;;  %v543_v32 = vpop.f32.mrf.mxu0  ;;  %v1382_v36 = vld [vmem:[#allocation2 + $0xff] sm:$0xff]  ;;  %v1060_v19 = vadd.f32 %v1028_v38, %v963_v29  ;;  %v1029_v37 = vmul.f32 %v1575_v6, %v2607_v55 }
  0xed   : > { %800 = vst.msk [vmem:[#allocation2 + $0x108] sm:$0xff] %vm739_vm1, %v718_v30  ;;  %v619_v42 = vmul.f32 %v2524_v27, %v543_v32  ;;  %v1743_v47 = vmax.f32 %v1711_v33, 0.0  ;;  %v1415_v48 = vmul.f32 %v2638_v23, %v1382_v36  ;;  %v1125_v54 = vmul.f32 %v1382_v36, %v2621_v2  ;;  %v1479_v58 = vld [vmem:[#allocation2 + $0x100] sm:$0xff]  ;;  %v573_v10 = vpop.f32.mrf.mxu3 }
  0xee   : > { %v1676_v7 = vmul.f32 %v2678_v5, %v1640_v59  ;;  %v1512_v8 = vmul.f32 %v2651_v40, %v1479_v58  ;;  %v696_v45 = vmax.f32 %v664_v0, 0.0  ;;  %v1350_v16 = vadd.f32 %v1318_v4, %v1253_v60 }
  0xef   : > { %v655_v11 = vadd.f32 %v2533_v28, %v619_v42  ;;  %v1775_v56 = vmin.f32 %v1743_v47, 6.0  ;;  %v1447_v63 = vadd.f32 %v1415_v48, %v1349_v50  ;;  %v1157_v46 = vadd.f32 %v1125_v54, %v1060_v19 }
  0xf0   : > { %v1712_v57 = vadd.f32 %v2687_v12, %v1676_v7  ;;  %v1222_v17 = vmul.f32 %v1479_v58, %v2629_v14  ;;  %v728_v39 = vmin.f32 %v696_v45, 6.0  ;;  %v1061_v9 = vadd.f32 %v1029_v37, %v964_v1 }
  0xf1   : > { %v687_v3 = vmax.f32 %v655_v11, 0.0  ;;  %2252 = vmatmul.msk.f32.gmra.mxu1 %vm739_vm1, %v1775_v56  ;;  %v1544_v62 = vadd.f32 %v1512_v8, %v1447_v63  ;;  %v868_v22 = vmul.f32 %v1382_v36, %v2581_v43  ;;  %v933_v30 = vmul.f32 %v1479_v58, %v2584_v44 }
  0xf2   : > { %v1744_v53 = vmax.f32 %v1712_v57, 0.0  ;;  %810 = vst.msk [vmem:[#allocation2 + $0x1d0] sm:$0xff] %vm739_vm1, %v728_v39  ;;  %v629_v59 = vmul.f32 %v2524_v27, %v573_v10  ;;  %v1254_v34 = vadd.f32 %v1222_v17, %v1157_v46 }
  0xf3   : > { %v719_v13 = vmin.f32 %v687_v3, 6.0  ;;  %v965_v63 = vadd.f32 %v933_v30, %v868_v22 }
  0xf4   : > { %v546_v61 = vpop.f32.mrf.mxu0  ;;  %v1576_v18 = vld [vmem:[#allocation2 + $0x101] sm:$0xff]  ;;  %v1577_v31 = vld [vmem:[#allocation2 + $0x109] sm:$0xff]  ;;  %v1776_v33 = vmin.f32 %v1744_v53, 6.0  ;;  %v665_v42 = vadd.f32 %v2533_v28, %v629_v59 }
  0xf5   : > { %v1383_v20 = vld [vmem:[#allocation2 + $0x107] sm:$0xff]  ;;  %801 = vst.msk [vmem:[#allocation2 + $0x128] sm:$0xff] %vm739_vm1, %v719_v13  ;;  %v620_v6 = vmul.f32 %v2524_v27, %v546_v61  ;;  %v1609_v24 = vmul.f32 %v2662_v51, %v1576_v18  ;;  %v1610_v41 = vmul.f32 %v2662_v51, %v1577_v31  ;;  %v1319_v47 = vmul.f32 %v1576_v18, %v2632_v15  ;;  %v576_v13 = vpop.f32.mrf.mxu3 }
  0xf6   : > { %v1480_v21 = vld [vmem:[#allocation2 + $0x108] sm:$0xff]  ;;  %v1416_v26 = vmul.f32 %v2638_v23, %v1383_v20  ;;  %v1126_v32 = vmul.f32 %v1383_v20, %v2621_v2  ;;  %v697_v29 = vmax.f32 %v665_v42, 0.0  ;;  %v1030_v54 = vmul.f32 %v1576_v18, %v2607_v55 }
  0xf7   : > { %v656_v35 = vadd.f32 %v2533_v28, %v620_v6  ;;  %v1641_v36 = vadd.f32 %v1609_v24, %v1544_v62  ;;  %v1513_v25 = vmul.f32 %v2651_v40, %v1480_v21  ;;  %v1223_v52 = vmul.f32 %v1480_v21, %v2629_v14 }
  0xf8   : > { %v1448_v38 = vadd.f32 %v1416_v26, %v1350_v16  ;;  %v1158_v7 = vadd.f32 %v1126_v32, %v1061_v9  ;;  %v869_v11 = vmul.f32 %v1383_v20, %v2581_v43  ;;  %v934_v56 = vmul.f32 %v1480_v21, %v2584_v44 }
  0xf9   : > { %v688_v48 = vmax.f32 %v656_v35, 0.0  ;;  %2253 = vmatmul.msk.f32.gmra.mxu1 %vm739_vm1, %v1776_v33  ;;  %v1677_v49 = vmul.f32 %v2678_v5, %v1641_v36  ;;  %v729_v19 = vmin.f32 %v697_v29, 6.0  ;;  %v1351_v1 = vadd.f32 %v1319_v47, %v1254_v34 }
  0xfa   : > { %v1545_v50 = vadd.f32 %v1513_v25, %v1448_v38  ;;  %v1255_v4 = vadd.f32 %v1223_v52, %v1158_v7  ;;  %v1320_v37 = vmul.f32 %v1577_v31, %v2632_v15  ;;  %v630_v17 = vmul.f32 %v2524_v27, %v576_v13 }
  0xfb   : > { %v720_v57 = vmin.f32 %v688_v48, 6.0  ;;  %v1713_v58 = vadd.f32 %v2687_v12, %v1677_v49  ;;  %811 = vst.msk [vmem:[#allocation2 + $0x1f0] sm:$0xff] %vm739_vm1, %v729_v19  ;;  %v1062_v61 = vadd.f32 %v1030_v54, %v965_v63  ;;  %v966_v18 = vadd.f32 %v934_v56, %v869_v11 }
  0xfc   : > { %v1642_v60 = vadd.f32 %v1610_v41, %v1545_v50  ;;  %v549_v0 = vpop.f32.mrf.mxu0  ;;  %v1384_v3 = vld [vmem:[#allocation2 + $0x127] sm:$0xff]  ;;  %v666_v22 = vadd.f32 %v2533_v28, %v630_v17  ;;  %v1031_v24 = vmul.f32 %v1577_v31, %v2607_v55  ;;  %v1352_v38 = vadd.f32 %v1320_v37, %v1255_v4 }
  0xfd   : > { %802 = vst.msk [vmem:[#allocation2 + $0x130] sm:$0xff] %vm739_vm1, %v720_v57  ;;  %v621_v53 = vmul.f32 %v2524_v27, %v549_v0  ;;  %v1745_v8 = vmax.f32 %v1713_v58, 0.0  ;;  %v1417_v46 = vmul.f32 %v2638_v23, %v1384_v3  ;;  %v1481_v16 = vld [vmem:[#allocation2 + $0x128] sm:$0xff]  ;;  %v1127_v62 = vmul.f32 %v1384_v3, %v2621_v2  ;;  %v1486_v41 = vld [vmem:[#allocation2 + $0x180] sm:$0xff]  ;;  %v579_v57 = vpop.f32.mrf.mxu3 }
  0xfe   : > { %v1678_v45 = vmul.f32 %v2678_v5, %v1642_v60  ;;  %v870_v26 = vmul.f32 %v1384_v3, %v2581_v43  ;;  %v1514_v33 = vmul.f32 %v2651_v40, %v1481_v16  ;;  %v935_v59 = vmul.f32 %v1481_v16, %v2584_v44 }
  0xff   : > { %v657_v39 = vadd.f32 %v2533_v28, %v621_v53  ;;  %v1777_v20 = vmin.f32 %v1745_v8, 6.0  ;;  %v1449_v9 = vadd.f32 %v1417_v46, %v1351_v1  ;;  %v1159_v6 = vadd.f32 %v1127_v62, %v1062_v61 }
 0x100   : > { %v1714_v21 = vadd.f32 %v2687_v12, %v1678_v45  ;;  %v698_v34 = vmax.f32 %v666_v22, 0.0  ;;  %v1224_v32 = vmul.f32 %v1481_v16, %v2629_v14  ;;  %v1063_v25 = vadd.f32 %v1031_v24, %v966_v18  ;;  %v2927_v24 = vld [vmem:[#allocation2 + $0x1a0] sm:$0xff] }
 0x101   : > { %v689_v10 = vmax.f32 %v657_v39, 0.0  ;;  %2254 = vmatmul.msk.f32.gmra.mxu1 %vm739_vm1, %v1777_v20  ;;  %v1546_v36 = vadd.f32 %v1514_v33, %v1449_v9  ;;  %v967_v52 = vadd.f32 %v935_v59, %v870_v26  ;;  %v2894_v58 = vmul.f32 %v2651_v40, %v1486_v41 }
 0x102   : > { %v1746_v30 = vmax.f32 %v1714_v21, 0.0  ;;  %v730_v7 = vmin.f32 %v698_v34, 6.0  ;;  %v1256_v50 = vadd.f32 %v1224_v32, %v1159_v6  ;;  %v631_v60 = vmul.f32 %v2524_v27, %v579_v57  ;;  %v2925_v6 = vld [vmem:[#allocation2 + $0x19f] sm:$0xff] }
 0x103   : > { %v721_v35 = vmin.f32 %v689_v10, 6.0  ;;  %v2901_v19 = vmul.f32 %v1486_v41, %v2629_v14  ;;  %v2922_v39 = vmul.f32 %v1486_v41, %v2584_v44  ;;  %v2931_v34 = vmul.f32 %v2638_v23, %v2925_v6  ;;  %v2953_v57 = vld [vmem:[#allocation2 + $0x1a1] sm:$0xff] }
 0x104   : > { %v552_v42 = vpop.f32.mrf.mxu0  ;;  %v1778_v31 = vmin.f32 %v1746_v30, 6.0  ;;  %v1578_v47 = vld [vmem:[#allocation2 + $0x129] sm:$0xff]  ;;  %v2891_v56 = vld [vmem:[#allocation2 + $0x131] sm:$0xff]  ;;  %812 = vst.msk [vmem:[#allocation2 + $0x1f8] sm:$0xff] %vm739_vm1, %v730_v7  ;;  %v2935_v32 = vmul.f32 %v2651_v40, %v2927_v24 }
 0x105   : > { %v1385_v48 = vld [vmem:[#allocation2 + $0x12f] sm:$0xff]  ;;  %803 = vst.msk [vmem:[#allocation2 + $0x150] sm:$0xff] %vm739_vm1, %v721_v35  ;;  %v622_v29 = vmul.f32 %v2524_v27, %v552_v42  ;;  %v1611_v54 = vmul.f32 %v2662_v51, %v1578_v47  ;;  %v1321_v63 = vmul.f32 %v1578_v47, %v2632_v15  ;;  %v1612_v53 = vmul.f32 %v2662_v51, %v2891_v56  ;;  %v2911_v27 = vld [vmem:[%s3529_s3] ss:$0 sm:$0xff]  ;;  %v582_v42 = vpop.f32.mrf.mxu3 }
 0x106   : > { %v2885_v49 = vld [vmem:[#allocation2 + $0x130] sm:$0xff]  ;;  %v1418_v11 = vmul.f32 %v2638_v23, %v1385_v48  ;;  %v1128_v0 = vmul.f32 %v1385_v48, %v2621_v2  ;;  %v667_v8 = vadd.f32 %v2911_v27, %v631_v60  ;;  %v1032_v17 = vmul.f32 %v1578_v47, %v2607_v55  ;;  %v2941_v35 = vld [vmem:[%s3528_s2] ss:$0 sm:$0xff] }
 0x107   : > { %v658_v1 = vadd.f32 %v2533_v28, %v622_v29  ;;  %v1643_v3 = vadd.f32 %v1611_v54, %v1546_v36  ;;  %v1515_v37 = vmul.f32 %v2651_v40, %v2885_v49  ;;  %v1225_v46 = vmul.f32 %v2885_v49, %v2629_v14 }
 0x108   : > { %v1450_v4 = vadd.f32 %v1418_v11, %v1352_v38  ;;  %v1160_v45 = vadd.f32 %v1128_v0, %v1063_v25  ;;  %v699_v61 = vmax.f32 %v667_v8, 0.0  ;;  %v1353_v62 = vadd.f32 %v1321_v63, %v1256_v50 }
 0x109   : > { %v690_v28 = vmax.f32 %v658_v1, 0.0  ;;  %2255 = vmatmul.msk.f32.gmra.mxu1 %vm739_vm1, %v1778_v31  ;;  %v1679_v13 = vmul.f32 %v2678_v5, %v1643_v3  ;;  %v1322_v18 = vmul.f32 %v2891_v56, %v2632_v15  ;;  %v1064_v59 = vadd.f32 %v1032_v17, %v967_v52 }
 0x10a   : > { %v1547_v16 = vadd.f32 %v1515_v37, %v1450_v4  ;;  %v1257_v22 = vadd.f32 %v1225_v46, %v1160_v45  ;;  %v731_v10 = vmin.f32 %v699_v61, 6.0  ;;  %v632_v47 = vmul.f32 %v2941_v35, %v582_v42 }
 0x10b   : > { %v722_v20 = vmin.f32 %v690_v28, 6.0  ;;  %v1715_v21 = vadd.f32 %v2687_v12, %v1679_v13  ;;  %v871_v50 = vmul.f32 %v1385_v48, %v2581_v43  ;;  %v936_v37 = vmul.f32 %v2885_v49, %v2584_v44 }
 0x10c   : > { %v1644_v9 = vadd.f32 %v1612_v53, %v1547_v16  ;;  %v555_v26 = vpop.f32.mrf.mxu0  ;;  %v1386_v30 = vld [vmem:[#allocation2 + $0x14f] sm:$0xff]  ;;  %813 = vst.msk [vmem:[#allocation2 + $0x218] sm:$0xff] %vm739_vm1, %v731_v10  ;;  %v668_v60 = vadd.f32 %v2911_v27, %v632_v47  ;;  %v2962_v53 = vld [vmem:[#allocation2 + $0x181] sm:$0xff]  ;;  %v1354_v46 = vadd.f32 %v1322_v18, %v1257_v22  ;;  %v2966_v28 = vmul.f32 %v2662_v51, %v2953_v57 }
 0x10d   : > { %v1483_v33 = vld [vmem:[#allocation2 + $0x150] sm:$0xff]  ;;  %804 = vst.msk [vmem:[#allocation2 + $0x158] sm:$0xff] %vm739_vm1, %v722_v20  ;;  %v623_v36 = vmul.f32 %v2941_v35, %v555_v26  ;;  %v1747_v38 = vmax.f32 %v1715_v21, 0.0  ;;  %v1419_v41 = vmul.f32 %v2638_v23, %v1386_v30  ;;  %v1129_v7 = vmul.f32 %v1386_v30, %v2621_v2 }
 0x10e   : > { %v1680_v25 = vmul.f32 %v2678_v5, %v1644_v9  ;;  %v1516_v31 = vmul.f32 %v2651_v40, %v1483_v33  ;;  %v872_v0 = vmul.f32 %v1386_v30, %v2581_v43  ;;  %v937_v1 = vmul.f32 %v1483_v33, %v2584_v44 }
 0x10f   : > { %v659_v52 = vadd.f32 %v2911_v27, %v623_v36  ;;  %v1779_v29 = vmin.f32 %v1747_v38, 6.0  ;;  %v1451_v11 = vadd.f32 %v1419_v41, %v1353_v62  ;;  %v1161_v63 = vadd.f32 %v1129_v7, %v1064_v59  ;;  %v2968_v62 = vld [vmem:[#allocation2 + $0x1a7] sm:$0xff]  ;;  %v585_v59 = vpop.f32.mrf.mxu3 }
 0x110   : > { %v1716_v54 = vadd.f32 %v2687_v12, %v1680_v25  ;;  %v1226_v48 = vmul.f32 %v1483_v33, %v2629_v14  ;;  %v700_v45 = vmax.f32 %v668_v60, 0.0  ;;  %v969_v17 = vadd.f32 %v937_v1, %v872_v0 }
 0x111   : > { %v691_v3 = vmax.f32 %v659_v52, 0.0  ;;  %2256 = vmatmul.msk.f32.gmra.mxu1 %vm739_vm1, %v1779_v29  ;;  %v1548_v8 = vadd.f32 %v1516_v31, %v1451_v11  ;;  %v968_v61 = vadd.f32 %v936_v37, %v871_v50  ;;  %v1033_v10 = vmul.f32 %v2891_v56, %v2607_v55  ;;  %v2993_v52 = vld [vmem:[#allocation2 + $0x1a8] sm:$0xff] }
 0x112   : > { %v1748_v4 = vmax.f32 %v1716_v54, 0.0  ;;  %v1258_v16 = vadd.f32 %v1226_v48, %v1161_v63  ;;  %v732_v9 = vmin.f32 %v700_v45, 6.0  ;;  %v2974_v18 = vmul.f32 %v2662_v51, %v2962_v53 }
 0x113   : > { %v723_v13 = vmin.f32 %v691_v3, 6.0  ;;  %v2982_v38 = vmul.f32 %v2962_v53, %v2632_v15  ;;  %v633_v25 = vmul.f32 %v2941_v35, %v585_v59  ;;  %v2990_v42 = vmul.f32 %v2638_v23, %v2968_v62 }
 0x114   : > { %v1780_v20 = vmin.f32 %v1748_v4, 6.0  ;;  %v1580_v21 = vld [vmem:[#allocation2 + $0x151] sm:$0xff]  ;;  %v1581_v33 = vld [vmem:[#allocation2 + $0x159] sm:$0xff]  ;;  %814 = vst.msk [vmem:[#allocation2 + $0x220] sm:$0xff] %vm739_vm1, %v732_v9  ;;  %v1065_v7 = vadd.f32 %v1033_v10, %v968_v61  ;;  %v2999_v60 = vmul.f32 %v2651_v40, %v2993_v52  ;;  %v3009_v61 = vld [vmem:[#allocation2 + $0x1a9] sm:$0xff] }
 0x115   : > { %v1387_v26 = vld [vmem:[#allocation2 + $0x157] sm:$0xff]  ;;  %805 = vst.msk [vmem:[#allocation2 + $0x178] sm:$0xff] %vm739_vm1, %v723_v13  ;;  %v1613_v22 = vmul.f32 %v2662_v51, %v1580_v21  ;;  %v1323_v36 = vmul.f32 %v1580_v21, %v2632_v15  ;;  %v1034_v41 = vmul.f32 %v1580_v21, %v2607_v55  ;;  %v1614_v29 = vmul.f32 %v2662_v51, %v1581_v33 }
 0x116   : > { %v1484_v49 = vld [vmem:[#allocation2 + $0x158] sm:$0xff]  ;;  %v1420_v30 = vmul.f32 %v2638_v23, %v1387_v26  ;;  %v1130_v50 = vmul.f32 %v1387_v26, %v2621_v2  ;;  %v669_v54 = vadd.f32 %v2911_v27, %v633_v25  ;;  %v873_v3 = vmul.f32 %v1387_v26, %v2581_v43 }
 0x117   : > { %v1517_v56 = vmul.f32 %v2651_v40, %v1484_v49  ;;  %v1645_v31 = vadd.f32 %v1613_v22, %v1548_v8  ;;  %v1355_v11 = vadd.f32 %v1323_v36, %v1258_v16  ;;  %v1066_v48 = vadd.f32 %v1034_v41, %v969_v17 }
 0x118   : > { %v1452_v47 = vadd.f32 %v1420_v30, %v1354_v46  ;;  %v1162_v1 = vadd.f32 %v1130_v50, %v1065_v7  ;;  %v701_v4 = vmax.f32 %v669_v54, 0.0  ;;  %v1227_v37 = vmul.f32 %v1484_v49, %v2629_v14 }
 0x119   : > { %2257 = vmatmul.msk.f32.gmra.mxu1 %vm739_vm1, %v1780_v20  ;;  %v1681_v63 = vmul.f32 %v2678_v5, %v1645_v31  ;;  %v938_v8 = vmul.f32 %v1484_v49, %v2584_v44  ;;  %v1324_v13 = vmul.f32 %v1581_v33, %v2632_v15  ;;  %v1035_v16 = vmul.f32 %v1581_v33, %v2607_v55  ;;  %v588_v33 = vpop.f32.mrf.mxu3 }
 0x11a   : > { %v1549_v0 = vadd.f32 %v1517_v56, %v1452_v47  ;;  %v733_v20 = vmin.f32 %v701_v4, 6.0  ;;  %v1259_v26 = vadd.f32 %v1227_v37, %v1162_v1  ;;  %v3013_v17 = vmul.f32 %v2662_v51, %v3009_v61  ;;  %v3024_v51 = vld [vmem:[%s3530_s4 + $0x8] ss:$0 sm:$0xff] }
 0x11b   : > { %v1717_v45 = vadd.f32 %v2687_v12, %v1681_v63  ;;  %v1133_v49 = vmul.f32 %v2925_v6, %v2621_v2  ;;  %v970_v56 = vadd.f32 %v938_v8, %v873_v3 }
 0x11c   : > { %v1646_v46 = vadd.f32 %v1614_v29, %v1549_v0  ;;  %v1388_v21 = vld [vmem:[#allocation2 + $0x177] sm:$0xff]  ;;  %v1389_v36 = vld [vmem:[#allocation2 + $0x17f] sm:$0xff]  ;;  %815 = vst.msk [vmem:[#allocation2 + $0x240] sm:$0xff] %vm739_vm1, %v733_v20  ;;  %v634_v29 = vmul.f32 %v2941_v35, %v588_v33  ;;  %v1356_v0 = vadd.f32 %v1324_v13, %v1259_v26 }
 0x11d   : > { %v1485_v9 = vld [vmem:[#allocation2 + $0x178] sm:$0xff]  ;;  %v1749_v22 = vmax.f32 %v1717_v45, 0.0  ;;  %v1421_v59 = vmul.f32 %v2638_v23, %v1388_v21  ;;  %v1131_v31 = vmul.f32 %v1388_v21, %v2621_v2  ;;  %v1422_v1 = vmul.f32 %v2638_v23, %v1389_v36 }
 0x11e   : > { %v1582_v10 = vld [vmem:[#allocation2 + $0x179] sm:$0xff]  ;;  %v1682_v30 = vmul.f32 %v2678_v5, %v1646_v46  ;;  %v1518_v25 = vmul.f32 %v2651_v40, %v1485_v9  ;;  %v1228_v5 = vmul.f32 %v1485_v9, %v2629_v14  ;;  %v670_v4 = vadd.f32 %v2911_v27, %v634_v29 }
 0x11f   : > { %v1615_v41 = vmul.f32 %v3024_v51, %v1582_v10  ;;  %v1781_v47 = vmin.f32 %v1749_v22, 6.0  ;;  %v1453_v50 = vadd.f32 %v1421_v59, %v1355_v11  ;;  %v1163_v54 = vadd.f32 %v1131_v31, %v1066_v48 }
 0x120   : > { %v1718_v7 = vadd.f32 %v2687_v12, %v1682_v30  ;;  %v1325_v63 = vmul.f32 %v1582_v10, %v2632_v15  ;;  %v1067_v37 = vadd.f32 %v1035_v16, %v970_v56  ;;  %v1132_v8 = vmul.f32 %v1389_v36, %v2621_v2  ;;  %v3043_v16 = vld [vmem:[%s3531_s5] ss:$0 sm:$0xff] }
 0x121   : > { %2258 = vmatmul.msk.f32.gmra.mxu1 %vm739_vm1, %v1781_v47  ;;  %v1550_v3 = vadd.f32 %v1518_v25, %v1453_v50  ;;  %v1260_v45 = vadd.f32 %v1228_v5, %v1163_v54  ;;  %v1454_v46 = vadd.f32 %v1422_v1, %v1356_v0  ;;  %v874_v12 = vmul.f32 %v1388_v21, %v2581_v43  ;;  %v591_v25 = vpop.f32.mrf.mxu3  ;;  %v3065_v0 = vld [vmem:[#allocation2 + $0x1c7] sm:$0xff] }
 0x122   : > { %v939_v11 = vmul.f32 %v1485_v9, %v2584_v44  ;;  %v1750_v48 = vmax.f32 %v1718_v7, 0.0  ;;  %v702_v22 = vmax.f32 %v670_v4, 0.0  ;;  %v1164_v13 = vadd.f32 %v1132_v8, %v1067_v37  ;;  %v3055_v7 = vld [vmem:[%s3532_s6] ss:$0 sm:$0xff]  ;;  %v3067_v1 = vld [vmem:[#allocation2 + $0x1c8] sm:$0xff] }
 0x123   : > { %v1647_v20 = vadd.f32 %v1615_v41, %v1550_v3  ;;  %v1357_v26 = vadd.f32 %v1325_v63, %v1260_v45  ;;  %v1551_v30 = vadd.f32 %v2894_v58, %v1454_v46  ;;  %v1036_v33 = vmul.f32 %v1582_v10, %v2607_v55 }
 0x124   : > { %v971_v59 = vadd.f32 %v939_v11, %v874_v12  ;;  %v734_v21 = vmin.f32 %v702_v22, 6.0  ;;  %v1261_v9 = vadd.f32 %v2901_v19, %v1164_v13  ;;  %v1230_v41 = vmul.f32 %v2927_v24, %v2629_v14  ;;  %v3079_v11 = vld [vmem:[#allocation2 + $0x1c9] sm:$0xff] }
 0x125   : > { %v1683_v56 = vmul.f32 %v3043_v16, %v1647_v20  ;;  %v1455_v31 = vadd.f32 %v2931_v34, %v1357_v26  ;;  %v1648_v58 = vadd.f32 %v2974_v18, %v1551_v30  ;;  %v635_v10 = vmul.f32 %v2941_v35, %v591_v25 }
 0x126   : > { %v1068_v5 = vadd.f32 %v1036_v33, %v971_v59  ;;  %v1782_v47 = vmin.f32 %v1750_v48, 6.0  ;;  %816 = vst.msk [vmem:[#allocation2 + $0x248] sm:$0xff] %vm739_vm1, %v734_v21  ;;  %v1358_v19 = vadd.f32 %v2982_v38, %v1261_v9  ;;  %v1327_v34 = vmul.f32 %v2953_v57, %v2632_v15 }
 0x127   : > { %v1719_v50 = vadd.f32 %v3055_v7, %v1683_v56  ;;  %v1552_v18 = vadd.f32 %v2935_v32, %v1455_v31  ;;  %v1684_v29 = vmul.f32 %v3043_v16, %v1648_v58  ;;  %v671_v54 = vadd.f32 %v2911_v27, %v635_v10 }
 0x128   : > { %v1165_v63 = vadd.f32 %v1133_v49, %v1068_v5  ;;  %v1456_v3 = vadd.f32 %v2990_v42, %v1358_v19  ;;  %v1425_v38 = vmul.f32 %v2638_v23, %v3065_v0  ;;  %v1522_v4 = vmul.f32 %v2651_v40, %v3067_v1 }
 0x129   : > { %2259 = vmatmul.msk.f32.gmra.mxu1 %vm739_vm1, %v1782_v47  ;;  %v875_v32 = vmul.f32 %v1389_v36, %v2581_v43  ;;  %v1751_v37 = vmax.f32 %v1719_v50, 0.0  ;;  %v1649_v8 = vadd.f32 %v2966_v28, %v1552_v18  ;;  %v703_v49 = vmax.f32 %v671_v54, 0.0  ;;  %v594_v26 = vpop.f32.mrf.mxu3 }
 0x12a   : > { %v1262_v45 = vadd.f32 %v1230_v41, %v1165_v63  ;;  %v1720_v46 = vadd.f32 %v3055_v7, %v1684_v29  ;;  %v1553_v12 = vadd.f32 %v2999_v60, %v1456_v3  ;;  %v1037_v48 = vmul.f32 %v2962_v53, %v2607_v55  ;;  %v3098_v41 = vld [vmem:[#allocation2 + $0x1cf] sm:$0xff] }
 0x12b   : > { %v972_v42 = vadd.f32 %v2922_v39, %v875_v32  ;;  %v1685_v20 = vmul.f32 %v3043_v16, %v1649_v8  ;;  %v735_v22 = vmin.f32 %v703_v49, 6.0  ;;  %v1619_v28 = vmul.f32 %v3024_v51, %v3079_v11  ;;  %v3109_v63 = vld [vmem:[#allocation2 + $0x1d0] sm:$0xff] }
 0x12c   : > { %v1359_v36 = vadd.f32 %v1327_v34, %v1262_v45  ;;  %v1650_v13 = vadd.f32 %v3013_v17, %v1553_v12  ;;  %v1134_v60 = vmul.f32 %v2968_v62, %v2621_v2  ;;  %v1231_v39 = vmul.f32 %v2993_v52, %v2629_v14  ;;  %v3119_v45 = vld [vmem:[#allocation2 + $0x1d1] sm:$0xff] }
 0x12d   : > { %v1069_v30 = vadd.f32 %v1037_v48, %v972_v42  ;;  %v1783_v59 = vmin.f32 %v1751_v37, 6.0  ;;  %v1721_v53 = vadd.f32 %v3055_v7, %v1685_v20  ;;  %817 = vst.msk [vmem:[#allocation2 + $0x268] sm:$0xff] %vm739_vm1, %v735_v22  ;;  %v636_v56 = vmul.f32 %v2941_v35, %v594_v26  ;;  %v3131_v26 = vld [vmem:[#allocation2 + $0x1f0] sm:$0xff] }
 0x12e   : > { %v1457_v33 = vadd.f32 %v1425_v38, %v1359_v36  ;;  %v1752_v21 = vmax.f32 %v1720_v46, 0.0  ;;  %v1686_v9 = vmul.f32 %v3043_v16, %v1650_v13  ;;  %v1328_v25 = vmul.f32 %v3009_v61, %v2632_v15  ;;  %v3129_v36 = vld [vmem:[#allocation2 + $0x1ef] sm:$0xff] }
 0x12f   : > { %v1166_v17 = vadd.f32 %v1134_v60, %v1069_v30  ;;  %v1753_v31 = vmax.f32 %v1721_v53, 0.0  ;;  %v672_v10 = vadd.f32 %v2911_v27, %v636_v56  ;;  %v1426_v5 = vmul.f32 %v2638_v23, %v3098_v41  ;;  %v3139_v53 = vld [vmem:[#allocation2 + $0x1f1] sm:$0xff] }
 0x130   : > { %v1554_v58 = vadd.f32 %v1522_v4, %v1457_v33  ;;  %v1722_v47 = vadd.f32 %v3055_v7, %v1686_v9  ;;  %v876_v19 = vmul.f32 %v2925_v6, %v2581_v43  ;;  %v941_v34 = vmul.f32 %v2927_v24, %v2584_v44 }
 0x131   : > { %2260 = vmatmul.msk.f32.gmra.mxu1 %vm739_vm1, %v1783_v59  ;;  %v1263_v50 = vadd.f32 %v1231_v39, %v1166_v17  ;;  %v1785_v18 = vmin.f32 %v1753_v31, 6.0  ;;  %v704_v54 = vmax.f32 %v672_v10, 0.0  ;;  %v1038_v3 = vmul.f32 %v2953_v57, %v2607_v55  ;;  %v597_v46 = vpop.f32.mrf.mxu3 }
 0x132   : > { %v1651_v29 = vadd.f32 %v1619_v28, %v1554_v58  ;;  %v1523_v4 = vmul.f32 %v2651_v40, %v3109_v63  ;;  %v973_v32 = vadd.f32 %v941_v34, %v876_v19  ;;  %v1135_v37 = vmul.f32 %v3065_v0, %v2621_v2  ;;  %v3160_v34 = vld [vmem:[#allocation2 + $0x1f7] sm:$0xff] }
 0x133   : > { %v1360_v38 = vadd.f32 %v1328_v25, %v1263_v50  ;;  %2262 = vmatmul.msk.f32.vlgmr.msra.gmra.mxu2 %vm739_vm1, %v1785_v18  ;;  %v736_v24 = vmin.f32 %v704_v54, 6.0  ;;  %v1784_v8 = vmin.f32 %v1752_v21, 6.0  ;;  %v1232_v57 = vmul.f32 %v3067_v1, %v2629_v14  ;;  %v3169_v54 = vld [vmem:[%s3535_s9] ss:$0 sm:$0xff] }
 0x134   : > { %v1687_v6 = vmul.f32 %v3043_v16, %v1651_v29  ;;  %v1070_v12 = vadd.f32 %v1038_v3, %v973_v32  ;;  %v1754_v42 = vmax.f32 %v1722_v47, 0.0  ;;  %v1620_v48 = vmul.f32 %v3024_v51, %v3119_v45 }
 0x135   : > { %v1458_v49 = vadd.f32 %v1426_v5, %v1360_v38  ;;  %818 = vst.msk [vmem:[#allocation2 + $0x270] sm:$0xff] %vm739_vm1, %v736_v24  ;;  %v637_v20 = vmul.f32 %v2941_v35, %v597_v46  ;;  %v1329_v22 = vmul.f32 %v3079_v11, %v2632_v15  ;;  %v877_v30 = vmul.f32 %v2968_v62, %v2581_v43  ;;  %v3178_v24 = vld [vmem:[#allocation2 + $0x1f8] sm:$0xff] }
 0x136   : > { %v1167_v13 = vadd.f32 %v1135_v37, %v1070_v12  ;;  %v942_v60 = vmul.f32 %v2993_v52, %v2584_v44  ;;  %v1723_v39 = vadd.f32 %v3055_v7, %v1687_v6  ;;  %v1039_v33 = vmul.f32 %v3009_v61, %v2607_v55  ;;  %v3153_v61 = vld [vmem:[%s3534_s8] ss:$0 sm:$0xff] }
 0x137   : > { %v1555_v28 = vadd.f32 %v1523_v4, %v1458_v49  ;;  %v673_v59 = vadd.f32 %v2911_v27, %v637_v20  ;;  %v1427_v21 = vmul.f32 %v2638_v23, %v3129_v36  ;;  %v1136_v62 = vmul.f32 %v3098_v41, %v2621_v2 }
 0x138   : > { %v1264_v56 = vadd.f32 %v1232_v57, %v1167_v13  ;;  %v974_v9 = vadd.f32 %v942_v60, %v877_v30  ;;  %v1786_v52 = vmin.f32 %v1754_v42, 6.0  ;;  %v1524_v31 = vmul.f32 %v2651_v40, %v3131_v26 }
 0x139   : > { %2261 = vmatmul.msk.f32.gmra.mxu1 %vm739_vm1, %v1784_v8  ;;  %v1652_v17 = vadd.f32 %v1620_v48, %v1555_v28  ;;  %v705_v25 = vmax.f32 %v673_v59, 0.0  ;;  %v1621_v10 = vmul.f32 %v3024_v51, %v3139_v53  ;;  %v1233_v47 = vmul.f32 %v3109_v63, %v2629_v14  ;;  %v600_v38 = vpop.f32.mrf.mxu3 }
 0x13a   : > { %v1361_v58 = vadd.f32 %v1329_v22, %v1264_v56  ;;  %v1071_v5 = vadd.f32 %v1039_v33, %v974_v9  ;;  %v1755_v50 = vmax.f32 %v1723_v39, 0.0  ;;  %v878_v18 = vmul.f32 %v3065_v0, %v2581_v43  ;;  %v1589_v39 = vld [vmem:[#allocation2 + $0x1f9] sm:$0xff] }
 0x13b   : > { %2263 = vmatmul.msk.f32.gmra.mxu2 %vm739_vm1, %v1786_v52  ;;  %v737_v19 = vmin.f32 %v705_v25, 6.0  ;;  %v943_v29 = vmul.f32 %v3067_v1, %v2584_v44  ;;  %v1330_v32 = vmul.f32 %v3119_v45, %v2632_v15  ;;  %v1040_v37 = vmul.f32 %v3079_v11, %v2607_v55  ;;  %v3201_v56 = vld [vmem:[#allocation2 + $0x217] sm:$0xff] }
 0x13c   : > { %v1459_v3 = vadd.f32 %v1427_v21, %v1361_v58  ;;  %v1168_v4 = vadd.f32 %v1136_v62, %v1071_v5  ;;  %v1688_v0 = vmul.f32 %v3043_v16, %v1652_v17  ;;  %v638_v1 = vmul.f32 %v2941_v35, %v600_v38  ;;  %v2308_v21 = vld [vmem:[%s2423_s20] sm:$0xff]  ;;  %v3208_v58 = vld [vmem:[#allocation2 + $0x218] sm:$0xff] }
 0x13d   : > { %819 = vst.msk [vmem:[#allocation2 + $0x290] sm:$0xff] %vm739_vm1, %v737_v19  ;;  %v975_v8 = vadd.f32 %v943_v29, %v878_v18  ;;  %v1137_v49 = vmul.f32 %v3129_v36, %v2621_v2  ;;  %v1428_v11 = vmul.f32 %v2638_v23, %v3160_v34  ;;  %v1787_v42 = vmin.f32 %v1755_v50, 6.0 }
 0x13e   : > { %v1918_v6 = vpop.f32.mrf.mxu1  ;;  %v1556_v12 = vadd.f32 %v1524_v31, %v1459_v3  ;;  %v1265_v57 = vadd.f32 %v1233_v47, %v1168_v4  ;;  %v674_v48 = vadd.f32 %v2911_v27, %v638_v1  ;;  %v1234_v35 = vmul.f32 %v3131_v26, %v2629_v14 }
 0x13f   : > { %v2018_v46 = vmul.f32 %v3153_v61, %v1918_v6  ;;  %v1072_v20 = vadd.f32 %v1040_v37, %v975_v8  ;;  %v1525_v30 = vmul.f32 %v2651_v40, %v3178_v24  ;;  %v1724_v60 = vadd.f32 %v3055_v7, %v1688_v0 }
 0x140   : > { %v1653_v28 = vadd.f32 %v1621_v10, %v1556_v12  ;;  %v1362_v13 = vadd.f32 %v1330_v32, %v1265_v57  ;;  %v706_v27 = vmax.f32 %v674_v48, 0.0  ;;  %v1331_v33 = vmul.f32 %v3139_v53, %v2632_v15 }
 0x141   : > { %v2054_v22 = vadd.f32 %v3169_v54, %v2018_v46  ;;  %v1169_v59 = vadd.f32 %v1137_v49, %v1072_v20  ;;  %v879_v17 = vmul.f32 %v3098_v41, %v2581_v43  ;;  %v944_v10 = vmul.f32 %v3109_v63, %v2584_v44  ;;  %v1590_v49 = vld [vmem:[#allocation2 + $0x219] sm:$0xff]  ;;  %v2309_v20 = vld [vmem:[%s2423_s20 + $0x8] sm:$0xff] }
 0x142   : > { %v1689_v62 = vmul.f32 %v3043_v16, %v1653_v28  ;;  %v1460_v52 = vadd.f32 %v1428_v11, %v1362_v13  ;;  %v738_v25 = vmin.f32 %v706_v27, 6.0  ;;  %v1041_v5 = vmul.f32 %v3119_v45, %v2607_v55  ;;  %v3231_v46 = vld [vmem:[#allocation2 + $0x21f] sm:$0xff] }
 0x143   : > { %v2086_v9 = vadd.f32 %v2308_v21, %v2054_v22  ;;  %2264 = vmatmul.msk.f32.gmra.mxu2 %vm739_vm1, %v1787_v42  ;;  %v1266_v31 = vadd.f32 %v1234_v35, %v1169_v59  ;;  %v1622_v50 = vmul.f32 %v3024_v51, %v1589_v39  ;;  %v1429_v41 = vmul.f32 %v2638_v23, %v3201_v56  ;;  %v1494_v27 = vld [vmem:[#allocation2 + $0x220] sm:$0xff] }
 0x144   : > { %v1557_v47 = vadd.f32 %v1525_v30, %v1460_v52  ;;  %v1756_v18 = vmax.f32 %v1724_v60, 0.0  ;;  %820 = vst.msk [vmem:[#allocation2 + $0x298] sm:$0xff] %vm739_vm1, %v738_v25  ;;  %v976_v3 = vadd.f32 %v944_v10, %v879_v17  ;;  %v1138_v63 = vmul.f32 %v3160_v34, %v2621_v2 }
 0x145   : > { %2118 = vst.msk [vmem:[%s3196_s25] sm:$0xff] %vm393_vm0, %v2086_v9  ;;  %v1363_v29 = vadd.f32 %v1331_v33, %v1266_v31  ;;  %v1526_v45 = vmul.f32 %v2651_v40, %v3208_v58  ;;  %v1725_v4 = vadd.f32 %v3055_v7, %v1689_v62  ;;  %v1235_v37 = vmul.f32 %v3178_v24, %v2629_v14 }
 0x146   : > { %v1921_v19 = vpop.f32.mrf.mxu1  ;;  %v1073_v32 = vadd.f32 %v1041_v5, %v976_v3  ;;  %v880_v6 = vmul.f32 %v3129_v36, %v2581_v43  ;;  %v1654_v1 = vadd.f32 %v1622_v50, %v1557_v47  ;;  %v945_v12 = vmul.f32 %v3131_v26, %v2584_v44 }
 0x147   : > { %v2019_v38 = vmul.f32 %v3153_v61, %v1921_v19  ;;  %v1461_v8 = vadd.f32 %v1429_v41, %v1363_v29  ;;  %v1788_v57 = vmin.f32 %v1756_v18, 6.0  ;;  %v1332_v42 = vmul.f32 %v1589_v39, %v2632_v15  ;;  %v1591_v18 = vld [vmem:[#allocation2 + $0x221] sm:$0xff] }
 0x148   : > { %v1170_v11 = vadd.f32 %v1138_v63, %v1073_v32  ;;  %v1042_v48 = vmul.f32 %v3139_v53, %v2607_v55  ;;  %v977_v35 = vadd.f32 %v945_v12, %v880_v6  ;;  %v1139_v22 = vmul.f32 %v3201_v56, %v2621_v2 }
 0x149   : > { %v2055_v0 = vadd.f32 %v3169_v54, %v2019_v38  ;;  %v1623_v28 = vmul.f32 %v3024_v51, %v1590_v49  ;;  %v1430_v26 = vmul.f32 %v2638_v23, %v3231_v46  ;;  %v1757_v30 = vmax.f32 %v1725_v4, 0.0 }
 0x14a   : > { %v1267_v13 = vadd.f32 %v1235_v37, %v1170_v11  ;;  %v1690_v60 = vmul.f32 %v3043_v16, %v1654_v1  ;;  %v1558_v53 = vadd.f32 %v1526_v45, %v1461_v8  ;;  %v1074_v59 = vadd.f32 %v1042_v48, %v977_v35  ;;  %v1398_v45 = vld [vmem:[#allocation2 + $0x23f] sm:$0xff] }
 0x14b   : > { %v2087_v36 = vadd.f32 %v2309_v20, %v2055_v0  ;;  %2265 = vmatmul.msk.f32.gmra.mxu2 %vm739_vm1, %v1788_v57  ;;  %v1236_v9 = vmul.f32 %v3208_v58, %v2629_v14  ;;  %v881_v62 = vmul.f32 %v3160_v34, %v2581_v43  ;;  %v946_v52 = vmul.f32 %v3178_v24, %v2584_v44  ;;  %v1495_v1 = vld [vmem:[#allocation2 + $0x240] sm:$0xff] }
 0x14c   : > { %v1364_v21 = vadd.f32 %v1332_v42, %v1267_v13  ;;  %v1171_v25 = vadd.f32 %v1139_v22, %v1074_v59  ;;  %v1043_v31 = vmul.f32 %v1589_v39, %v2607_v55  ;;  %v1527_v10 = vmul.f32 %v2651_v40, %v1494_v27  ;;  %v2310_v39 = vld [vmem:[%s2423_s20 + $0x10] sm:$0xff]  ;;  %v3278_v13 = vld [vmem:[#allocation2 + $0x247] sm:$0xff] }
 0x14d   : > { %2119 = vst.msk [vmem:[%s3196_s25 + $0x8] sm:$0xff] %vm393_vm0, %v2087_v36  ;;  %v978_v5 = vadd.f32 %v946_v52, %v881_v62  ;;  %v1140_v47 = vmul.f32 %v3231_v46, %v2621_v2  ;;  %v1789_v41 = vmin.f32 %v1757_v30, 6.0  ;;  %v1726_v34 = vadd.f32 %v3055_v7, %v1690_v60  ;;  %v1592_v52 = vld [vmem:[#allocation2 + $0x241] sm:$0xff] }
 0x14e   : > { %v1924_v33 = vpop.f32.mrf.mxu1  ;;  %v1655_v19 = vadd.f32 %v1623_v28, %v1558_v53  ;;  %v1462_v24 = vadd.f32 %v1430_v26, %v1364_v21  ;;  %v1268_v29 = vadd.f32 %v1236_v9, %v1171_v25  ;;  %v1333_v3 = vmul.f32 %v1590_v49, %v2632_v15  ;;  %v2311_v9 = vld [vmem:[%s2423_s20 + $0x18] sm:$0xff] }
 0x14f   : > { %v2020_v17 = vmul.f32 %v3153_v61, %v1924_v33  ;;  %v1075_v63 = vadd.f32 %v1043_v31, %v978_v5  ;;  %v1237_v32 = vmul.f32 %v1494_v27, %v2629_v14  ;;  %v882_v37 = vmul.f32 %v3201_v56, %v2581_v43 }
 0x150   : > { %v1758_v6 = vmax.f32 %v1726_v34, 0.0  ;;  %v1624_v0 = vmul.f32 %v3024_v51, %v1591_v18  ;;  %v947_v8 = vmul.f32 %v3208_v58, %v2584_v44  ;;  %v1044_v12 = vmul.f32 %v1590_v49, %v2607_v55 }
 0x151   : > { %v2056_v50 = vadd.f32 %v3169_v54, %v2020_v17  ;;  %v1172_v4 = vadd.f32 %v1140_v47, %v1075_v63  ;;  %v1691_v11 = vmul.f32 %v3043_v16, %v1655_v19  ;;  %v1559_v42 = vadd.f32 %v1527_v10, %v1462_v24  ;;  %v1496_v10 = vld [vmem:[#allocation2 + $0x248] sm:$0xff] }
 0x152   : > { %v1365_v48 = vadd.f32 %v1333_v3, %v1268_v29  ;;  %v1431_v20 = vmul.f32 %v2638_v23, %v1398_v45  ;;  %v979_v36 = vadd.f32 %v947_v8, %v882_v37  ;;  %v1528_v35 = vmul.f32 %v2651_v40, %v1495_v1 }
 0x153   : > { %v2088_v38 = vadd.f32 %v2310_v39, %v2056_v50  ;;  %2266 = vmatmul.msk.f32.gmra.mxu2 %vm739_vm1, %v1789_v41  ;;  %v1269_v22 = vadd.f32 %v1237_v32, %v1172_v4  ;;  %v1334_v28 = vmul.f32 %v1591_v18, %v2632_v15  ;;  %v1141_v58 = vmul.f32 %v1398_v45, %v2621_v2  ;;  %v1593_v39 = vld [vmem:[#allocation2 + $0x249] sm:$0xff] }
 0x154   : > { %v1790_v26 = vmin.f32 %v1758_v6, 6.0  ;;  %v1076_v30 = vadd.f32 %v1044_v12, %v979_v36  ;;  %v883_v60 = vmul.f32 %v3231_v46, %v2581_v43  ;;  %v1727_v53 = vadd.f32 %v3055_v7, %v1691_v11  ;;  %v2312_v11 = vld [vmem:[%s2423_s20 + $0x20] sm:$0xff] }
 0x155   : > { %2120 = vst.msk [vmem:[%s3196_s25 + $0x10] sm:$0xff] %vm393_vm0, %v2088_v38  ;;  %v1656_v59 = vadd.f32 %v1624_v0, %v1559_v42  ;;  %v1463_v33 = vadd.f32 %v1431_v20, %v1365_v48  ;;  %v948_v21 = vmul.f32 %v1494_v27, %v2584_v44  ;;  %v1432_v17 = vmul.f32 %v2638_v23, %v3278_v13 }
 0x156   : > { %v1927_v57 = vpop.f32.mrf.mxu1  ;;  %v1238_v25 = vmul.f32 %v1495_v1, %v2629_v14  ;;  %v1366_v31 = vadd.f32 %v1334_v28, %v1269_v22  ;;  %v1173_v46 = vadd.f32 %v1141_v58, %v1076_v30  ;;  %v1045_v47 = vmul.f32 %v1591_v18, %v2607_v55  ;;  %v3299_v18 = vld [vmem:[#allocation2 + $0x267] sm:$0xff] }
 0x157   : > { %v2021_v56 = vmul.f32 %v3153_v61, %v1927_v57  ;;  %v980_v5 = vadd.f32 %v948_v21, %v883_v60  ;;  %v1759_v27 = vmax.f32 %v1727_v53, 0.0  ;;  %v1692_v41 = vmul.f32 %v3043_v16, %v1656_v59  ;;  %v1594_v21 = vld [vmem:[#allocation2 + $0x269] sm:$0xff] }
 0x158   : > { %v1560_v34 = vadd.f32 %v1528_v35, %v1463_v33  ;;  %v1625_v19 = vmul.f32 %v3024_v51, %v1592_v52  ;;  %v1529_v29 = vmul.f32 %v2651_v40, %v1496_v10  ;;  %v1335_v3 = vmul.f32 %v1592_v52, %v2632_v15  ;;  %v1497_v35 = vld [vmem:[#allocation2 + $0x268] sm:$0xff] }
 0x159   : > { %v2057_v49 = vadd.f32 %v3169_v54, %v2021_v56  ;;  %v1464_v63 = vadd.f32 %v1432_v17, %v1366_v31  ;;  %v1270_v38 = vadd.f32 %v1238_v25, %v1173_v46  ;;  %v1077_v4 = vadd.f32 %v1045_v47, %v980_v5  ;;  %v3323_v17 = vld [vmem:[#allocation2 + $0x26f] sm:$0xff] }
 0x15a   : > { %v1142_v32 = vmul.f32 %v3278_v13, %v2621_v2  ;;  %v884_v6 = vmul.f32 %v1398_v45, %v2581_v43  ;;  %v949_v0 = vmul.f32 %v1495_v1, %v2584_v44  ;;  %v1791_v8 = vmin.f32 %v1759_v27, 6.0 }
 0x15b   : > { %v2089_v62 = vadd.f32 %v2311_v9, %v2057_v49  ;;  %2267 = vmatmul.msk.f32.gmra.mxu2 %vm739_vm1, %v1790_v26  ;;  %v1728_v12 = vadd.f32 %v3055_v7, %v1692_v41  ;;  %v1657_v57 = vadd.f32 %v1625_v19, %v1560_v34  ;;  %v1626_v48 = vmul.f32 %v3024_v51, %v1593_v39 }
 0x15c   : > { %v1433_v20 = vmul.f32 %v2638_v23, %v3299_v18  ;;  %v1561_v56 = vadd.f32 %v1529_v29, %v1464_v63  ;;  %v1367_v36 = vadd.f32 %v1335_v3, %v1270_v38  ;;  %v1174_v22 = vadd.f32 %v1142_v32, %v1077_v4  ;;  %v1498_v3 = vld [vmem:[#allocation2 + $0x270] sm:$0xff] }
 0x15d   : > { %2121 = vst.msk [vmem:[%s3196_s25 + $0x18] sm:$0xff] %vm393_vm0, %v2089_v62  ;;  %v1239_v45 = vmul.f32 %v1496_v10, %v2629_v14  ;;  %v981_v1 = vadd.f32 %v949_v0, %v884_v6  ;;  %v1046_v28 = vmul.f32 %v1592_v52, %v2607_v55  ;;  %v1760_v49 = vmax.f32 %v1728_v12, 0.0 }
 0x15e   : > { %v1930_v50 = vpop.f32.mrf.mxu1  ;;  %v1693_v26 = vmul.f32 %v3043_v16, %v1657_v57  ;;  %v1530_v60 = vmul.f32 %v2651_v40, %v1497_v35  ;;  %v1336_v53 = vmul.f32 %v1593_v39, %v2632_v15  ;;  %v1658_v59 = vadd.f32 %v1626_v48, %v1561_v56 }
 0x15f   : > { %v2022_v24 = vmul.f32 %v3153_v61, %v1930_v50  ;;  %v1465_v33 = vadd.f32 %v1433_v20, %v1367_v36  ;;  %v1271_v9 = vadd.f32 %v1239_v45, %v1174_v22  ;;  %v1143_v62 = vmul.f32 %v3299_v18, %v2621_v2  ;;  %v2313_v50 = vld [vmem:[%s2423_s20 + $0x28] sm:$0xff] }
 0x160   : > { %v1078_v25 = vadd.f32 %v1046_v28, %v981_v1  ;;  %v885_v31 = vmul.f32 %v3278_v13, %v2581_v43  ;;  %v950_v46 = vmul.f32 %v1496_v10, %v2584_v44  ;;  %v1792_v5 = vmin.f32 %v1760_v49, 6.0  ;;  %v1402_v20 = vld [vmem:[#allocation2 + $0x28f] sm:$0xff] }
 0x161   : > { %v2058_v37 = vadd.f32 %v3169_v54, %v2022_v24  ;;  %v1729_v47 = vadd.f32 %v3055_v7, %v1693_v26  ;;  %v1627_v41 = vmul.f32 %v3024_v51, %v1594_v21  ;;  %v1694_v34 = vmul.f32 %v3043_v16, %v1658_v59  ;;  %v2314_v1 = vld [vmem:[%s2423_s20 + $0x30] sm:$0xff] }
 0x162   : > { %v1562_v19 = vadd.f32 %v1530_v60, %v1465_v33  ;;  %v1368_v24 = vadd.f32 %v1336_v53, %v1271_v9  ;;  %v1434_v29 = vmul.f32 %v2638_v23, %v3323_v17  ;;  %v1175_v13 = vadd.f32 %v1143_v62, %v1078_v25  ;;  %v1499_v59 = vld [vmem:[#allocation2 + $0x290] sm:$0xff] }
 0x163   : > { %v2090_v42 = vadd.f32 %v2312_v11, %v2058_v37  ;;  %2268 = vmatmul.msk.f32.gmra.mxu2 %vm739_vm1, %v1791_v8  ;;  %v1240_v10 = vmul.f32 %v1497_v35, %v2629_v14  ;;  %v982_v63 = vadd.f32 %v950_v46, %v885_v31  ;;  %v1047_v38 = vmul.f32 %v1593_v39, %v2607_v55 }
 0x164   : > { %v1761_v32 = vmax.f32 %v1729_v47, 0.0  ;;  %v1531_v6 = vmul.f32 %v2651_v40, %v1498_v3  ;;  %v1730_v0 = vadd.f32 %v3055_v7, %v1694_v34  ;;  %v1659_v8 = vadd.f32 %v1627_v41, %v1562_v19  ;;  %v1596_v41 = vld [vmem:[#allocation2 + $0x291] sm:$0xff] }
 0x165   : > { %2122 = vst.msk [vmem:[%s3196_s25 + $0x20] sm:$0xff] %vm393_vm0, %v2090_v42  ;;  %v1466_v12 = vadd.f32 %v1434_v29, %v1368_v24  ;;  %v1337_v57 = vmul.f32 %v1594_v21, %v2632_v15  ;;  %v1595_v42 = vld [vmem:[#allocation2 + $0x271] sm:$0xff]  ;;  %v1272_v48 = vadd.f32 %v1240_v10, %v1175_v13  ;;  %v1079_v39 = vadd.f32 %v1047_v38, %v982_v63 }
 0x166   : > { %v1933_v58 = vpop.f32.mrf.mxu1  ;;  %v1144_v56 = vmul.f32 %v3323_v17, %v2621_v2  ;;  %v1793_v36 = vmin.f32 %v1761_v32, 6.0  ;;  %v886_v22 = vmul.f32 %v3299_v18, %v2581_v43  ;;  %v951_v45 = vmul.f32 %v1497_v35, %v2584_v44  ;;  %v1403_v19 = vld [vmem:[#allocation2 + $0x297] sm:$0xff] }
 0x167   : > { %v2023_v30 = vmul.f32 %v3153_v61, %v1933_v58  ;;  %v1762_v58 = vmax.f32 %v1730_v0, 0.0  ;;  %v1695_v49 = vmul.f32 %v3043_v16, %v1659_v8  ;;  %v1628_v26 = vmul.f32 %v3024_v51, %v1595_v42  ;;  %v2315_v10 = vld [vmem:[%s2423_s20 + $0x38] sm:$0xff] }
 0x168   : > { %v1563_v60 = vadd.f32 %v1531_v6, %v1466_v12  ;;  %v1369_v53 = vadd.f32 %v1337_v57, %v1272_v48  ;;  %v1176_v33 = vadd.f32 %v1144_v56, %v1079_v39  ;;  %v1241_v18 = vmul.f32 %v1498_v3, %v2629_v14  ;;  %v1500_v0 = vld [vmem:[#allocation2 + $0x298] sm:$0xff] }
 0x169   : > { %v2059_v52 = vadd.f32 %v3169_v54, %v2023_v30  ;;  %v1435_v30 = vmul.f32 %v2638_v23, %v1402_v20  ;;  %v983_v9 = vadd.f32 %v951_v45, %v886_v22  ;;  %v1048_v62 = vmul.f32 %v1594_v21, %v2607_v55  ;;  %v1597_v45 = vld [vmem:[#allocation2 + $0x299] sm:$0xff] }
 0x16a   : > { %v1794_v25 = vmin.f32 %v1762_v58, 6.0  ;;  %v1731_v31 = vadd.f32 %v3055_v7, %v1695_v49  ;;  %v1532_v46 = vmul.f32 %v2651_v40, %v1499_v59  ;;  %v1273_v34 = vadd.f32 %v1241_v18, %v1176_v33 }
 0x16b   : > { %v2091_v27 = vadd.f32 %v2313_v50, %v2059_v52  ;;  %2269 = vmatmul.msk.f32.gmra.mxu2 %vm739_vm1, %v1792_v5  ;;  %v1338_v5 = vmul.f32 %v1595_v42, %v2632_v15  ;;  %v1660_v50 = vadd.f32 %v1628_v26, %v1563_v60  ;;  %v1080_v24 = vadd.f32 %v1048_v62, %v983_v9 }
 0x16c   : > { %v1145_v21 = vmul.f32 %v1402_v20, %v2621_v2  ;;  %v887_v29 = vmul.f32 %v3323_v17, %v2581_v43  ;;  %v952_v13 = vmul.f32 %v1498_v3, %v2584_v44  ;;  %v1763_v38 = vmax.f32 %v1731_v31, 0.0 }
 0x16d   : > { %2123 = vst.msk [vmem:[%s3196_s25 + $0x28] sm:$0xff] %vm393_vm0, %v2091_v27  ;;  %v1467_v27 = vadd.f32 %v1435_v30, %v1369_v53  ;;  %v1696_v32 = vmul.f32 %v3043_v16, %v1660_v50  ;;  %v1436_v6 = vmul.f32 %v2638_v23, %v1403_v19  ;;  %v1242_v8 = vmul.f32 %v1499_v59, %v2629_v14  ;;  %v1598_v50 = vld [vmem:[#allocation2 + $0x2b9] sm:$0xff] }
 0x16e   : > { %v1936_v4 = vpop.f32.mrf.mxu1  ;;  %v1370_v17 = vadd.f32 %v1338_v5, %v1273_v34  ;;  %v1177_v44 = vadd.f32 %v1145_v21, %v1080_v24  ;;  %v984_v3 = vadd.f32 %v952_v13, %v887_v29  ;;  %v1049_v12 = vmul.f32 %v1595_v42, %v2607_v55  ;;  %v2316_v42 = vld [vmem:[%s2423_s20 + $0x40] sm:$0xff] }
 0x16f   : > { %v2024_v37 = vmul.f32 %v3153_v61, %v1936_v4  ;;  %v1629_v4 = vmul.f32 %v3024_v51, %v1596_v41  ;;  %v1533_v48 = vmul.f32 %v2651_v40, %v1500_v0  ;;  %v1732_v39 = vadd.f32 %v3055_v7, %v1696_v32  ;;  %v1405_v34 = vld [vmem:[#allocation2 + $0x2bf] sm:$0xff] }
 0x170   : > { %v1468_v22 = vadd.f32 %v1436_v6, %v1370_v17  ;;  %v1081_v58 = vadd.f32 %v1049_v12, %v984_v3  ;;  %v1146_v55 = vmul.f32 %v1403_v19, %v2621_v2  ;;  %v1630_v60 = vmul.f32 %v3024_v51, %v1597_v45  ;;  %v2317_v19 = vld [vmem:[%s2423_s20 + $0x48] sm:$0xff] }
 0x171   : > { %v2060_v11 = vadd.f32 %v3169_v54, %v2024_v37  ;;  %v1564_v37 = vadd.f32 %v1532_v46, %v1467_v27  ;;  %v1764_v26 = vmax.f32 %v1732_v39, 0.0  ;;  %v1243_v2 = vmul.f32 %v1500_v0, %v2629_v14 }
 0x172   : > { %v1565_v33 = vadd.f32 %v1533_v48, %v1468_v22  ;;  %v1178_v9 = vadd.f32 %v1146_v55, %v1081_v58  ;;  %v1631_v14 = vmul.f32 %v3024_v51, %v1598_v50  ;;  %v1438_v21 = vmul.f32 %v2638_v23, %v1405_v34  ;;  %v2319_v22 = vld [vmem:[%s2423_s20 + $0x58] sm:$0xff]  ;;  %v2324_v34 = vld [vmem:[%s2423_s20 + $0x80] sm:$0xff] }
 0x173   : > { %v2092_v28 = vadd.f32 %v2314_v1, %v2060_v11  ;;  %2270 = vmatmul.msk.f32.gmra.mxu2 %vm739_vm1, %v1793_v36  ;;  %v1795_v11 = vmin.f32 %v1763_v38, 6.0  ;;  %v1661_v56 = vadd.f32 %v1629_v4, %v1564_v37  ;;  %v1339_v36 = vmul.f32 %v1596_v41, %v2632_v15 }
 0x174   : > { %v1274_v1 = vadd.f32 %v1242_v8, %v1177_v44  ;;  %v1662_v5 = vadd.f32 %v1630_v60, %v1565_v33  ;;  %v1275_v27 = vadd.f32 %v1243_v2, %v1178_v9  ;;  %v1340_v41 = vmul.f32 %v1597_v45, %v2632_v15  ;;  %v1502_v15 = vld [vmem:[#allocation2 + $0x2c0] sm:$0xff] }
 0x175   : > { %2124 = vst.msk [vmem:[%s3196_s25 + $0x30] sm:$0xff] %vm393_vm0, %v2092_v28  ;;  %v1404_v28 = vld [vmem:[#allocation2 + $0x2b7] sm:$0xff]  ;;  %v1697_v30 = vmul.f32 %v3043_v16, %v1661_v56  ;;  %v1535_v37 = vmul.f32 %v2651_v40, %v1502_v15  ;;  %v1599_v44 = vld [vmem:[#allocation2 + $0x2c1] sm:$0xff] }
 0x176   : > { %v1939_v35 = vpop.f32.mrf.mxu1  ;;  %v1437_v53 = vmul.f32 %v2638_v23, %v1404_v28  ;;  %v1371_v18 = vadd.f32 %v1339_v36, %v1274_v1  ;;  %v1372_v38 = vadd.f32 %v1340_v41, %v1275_v27  ;;  %v2318_v23 = vld [vmem:[%s2423_s20 + $0x50] sm:$0xff]  ;;  %v2323_v27 = vld [vmem:[%s2423_s20 + $0x78] sm:$0xff] }
 0x177   : > { %v2025_v52 = vmul.f32 %v3153_v61, %v1939_v35  ;;  %v1501_v35 = vld [vmem:[#allocation2 + $0x2b8] sm:$0xff]  ;;  %v1733_v31 = vadd.f32 %v3055_v7, %v1697_v30  ;;  %v2326_v15 = vld [vmem:[%s2423_s20 + $0x90] sm:$0xff] }
 0x178   : > { %v1534_v46 = vmul.f32 %v2651_v40, %v1501_v35  ;;  %v1632_v40 = vmul.f32 %v3024_v51, %v1599_v44  ;;  %v2328_v44 = vld [vmem:[%s2423_s20 + $0xa0] sm:$0xff] }
 0x179   : > { %v2061_v47 = vadd.f32 %v3169_v54, %v2025_v52  ;;  %v1765_v13 = vmax.f32 %v1733_v31, 0.0 }
 0x17b   : > { %v2093_v63 = vadd.f32 %v2315_v10, %v2061_v47  ;;  %2271 = vmatmul.msk.f32.gmra.mxu2 %vm739_vm1, %v1794_v25  ;;  %v1796_v25 = vmin.f32 %v1764_v26, 6.0  ;;  %v1469_v47 = vadd.f32 %v1437_v53, %v1371_v18  ;;  %v1698_v10 = vmul.f32 %v3043_v16, %v1662_v5  ;;  %v2320_v26 = vld [vmem:[%s2423_s20 + $0x60] sm:$0xff]  ;;  %v2321_v18 = vld [vmem:[%s2423_s20 + $0x68] sm:$0xff] }
 0x17c   : > { %v1797_v6 = vmin.f32 %v1765_v13, 6.0 }
 0x17d   : > { %2125 = vst.msk [vmem:[%s3196_s25 + $0x38] sm:$0xff] %vm393_vm0, %v2093_v63  ;;  %v1566_v63 = vadd.f32 %v1534_v46, %v1469_v47  ;;  %v1734_v0 = vadd.f32 %v3055_v7, %v1698_v10 }
 0x17e   : > { %v1942_v43 = vpop.f32.mrf.mxu1 }
 0x17f   : > { %v2026_v57 = vmul.f32 %v3153_v61, %v1942_v43  ;;  %v1663_v8 = vadd.f32 %v1631_v14, %v1566_v63  ;;  %v1470_v43 = vadd.f32 %v1438_v21, %v1372_v38  ;;  %v1766_v12 = vmax.f32 %v1734_v0, 0.0  ;;  %v2327_v0 = vld [vmem:[%s2423_s20 + $0x98] sm:$0xff] }
 0x181   : > { %v2062_v20 = vadd.f32 %v3169_v54, %v2026_v57  ;;  %v1699_v57 = vmul.f32 %v3043_v16, %v1663_v8  ;;  %v1798_v39 = vmin.f32 %v1766_v12, 6.0 }
 0x183   : > { %v2094_v49 = vadd.f32 %v2316_v42, %v2062_v20  ;;  %2272 = vmatmul.msk.f32.gmra.mxu2 %vm739_vm1, %v1795_v11  ;;  %v1567_v11 = vadd.f32 %v1535_v37, %v1470_v43  ;;  %v1735_v56 = vadd.f32 %v3055_v7, %v1699_v57 }
 0x185   : > { %2126 = vst.msk [vmem:[%s3196_s25 + $0x40] sm:$0xff] %vm393_vm0, %v2094_v49  ;;  %v1664_v36 = vadd.f32 %v1632_v40, %v1567_v11  ;;  %v1767_v28 = vmax.f32 %v1735_v56, 0.0  ;;  %v2329_v40 = vld [vmem:[%s2423_s20 + $0xa8] sm:$0xff] }
 0x186   : > { %v1945_v59 = vpop.f32.mrf.mxu1 }
 0x187   : > { %v2027_v62 = vmul.f32 %v3153_v61, %v1945_v59  ;;  %v1700_v51 = vmul.f32 %v3043_v16, %v1664_v36  ;;  %v1799_v42 = vmin.f32 %v1767_v28, 6.0  ;;  %v2330_v36 = vld [vmem:[%s2423_s20 + $0xb0] sm:$0xff] }
 0x189   : > { %v2063_v52 = vadd.f32 %v3169_v54, %v2027_v62  ;;  %v1736_v49 = vadd.f32 %v3055_v7, %v1700_v51  ;;  %v2322_v62 = vld [vmem:[%s2423_s20 + $0x70] sm:$0xff]  ;;  %v2331_v51 = vld [vmem:[%s2423_s20 + $0xb8] sm:$0xff] }
 0x18b   : > { %v2095_v24 = vadd.f32 %v2317_v19, %v2063_v52  ;;  %2273 = vmatmul.msk.f32.gmra.mxu2 %vm739_vm1, %v1796_v25  ;;  %v1768_v53 = vmax.f32 %v1736_v49, 0.0 }
 0x18d   : > { %2127 = vst.msk [vmem:[%s3196_s25 + $0x48] sm:$0xff] %vm393_vm0, %v2095_v24  ;;  %v1800_v33 = vmin.f32 %v1768_v53, 6.0 }
 0x18e   : > { %v1948_v29 = vpop.f32.mrf.mxu1 }
 0x18f   : > { %v2028_v4 = vmul.f32 %v3153_v61, %v1948_v29  ;;  %v2325_v29 = vld [vmem:[%s2423_s20 + $0x88] sm:$0xff] }
 0x191   : > { %v2064_v32 = vadd.f32 %v3169_v54, %v2028_v4 }
 0x193   : > { %v2096_v17 = vadd.f32 %v2318_v23, %v2064_v32  ;;  %2274 = vmatmul.msk.f32.gmra.mxu2 %vm739_vm1, %v1797_v6 }
 0x195   : > { %2128 = vst.msk [vmem:[%s3196_s25 + $0x50] sm:$0xff] %vm393_vm0, %v2096_v17 }
 0x196   : > { %v1951_v3 = vpop.f32.mrf.mxu1 }
 0x197   : > { %v2029_v48 = vmul.f32 %v3153_v61, %v1951_v3 }
 0x199   : > { %v2065_v20 = vadd.f32 %v3169_v54, %v2029_v48 }
 0x19b   : > { %v2097_v45 = vadd.f32 %v2319_v22, %v2065_v20  ;;  %2275 = vmatmul.msk.f32.gmra.mxu2 %vm739_vm1, %v1798_v39 }
 0x19d   : > { %2129 = vst.msk [vmem:[%s3196_s25 + $0x58] sm:$0xff] %vm393_vm0, %v2097_v45 }
 0x19e   : > { %v1954_v1 = vpop.f32.mrf.mxu1 }
 0x19f   : > { %v2030_v58 = vmul.f32 %v3153_v61, %v1954_v1 }
 0x1a1   : > { %v2066_v55 = vadd.f32 %v3169_v54, %v2030_v58 }
 0x1a3   : > { %v2098_v30 = vadd.f32 %v2320_v26, %v2066_v55  ;;  %2276 = vmatmul.msk.f32.gmra.mxu2 %vm739_vm1, %v1799_v42  ;;  %v2332_v26 = vld [vmem:[%s2423_s20 + $0xc0] sm:$0xff] }
 0x1a5   : > { %2130 = vst.msk [vmem:[%s3196_s25 + $0x60] sm:$0xff] %vm393_vm0, %v2098_v30 }
 0x1a6   : > { %v1957_v60 = vpop.f32.mrf.mxu1 }
 0x1a7   : > { %v2031_v16 = vmul.f32 %v3153_v61, %v1957_v60 }
 0x1a9   : > { %v2067_v59 = vadd.f32 %v3169_v54, %v2031_v16 }
 0x1ab   : > { %v2099_v35 = vadd.f32 %v2321_v18, %v2067_v59  ;;  %2277 = vmatmul.msk.f32.gmra.mxu2 %vm739_vm1, %v1800_v33  ;;  %v2333_v59 = vld [vmem:[%s2423_s20 + $0xc8] sm:$0xff] }
 0x1ad   : > { %2131 = vst.msk [vmem:[%s3196_s25 + $0x68] sm:$0xff] %vm393_vm0, %v2099_v35 }
 0x1ae   : > { %v1960_v7 = vpop.f32.mrf.mxu1 }
 0x1af   : > { %v2032_v9 = vmul.f32 %v3153_v61, %v1960_v7 }
 0x1b1   : > { %v2068_v2 = vadd.f32 %v3169_v54, %v2032_v9  ;;  %v2334_v9 = vld [vmem:[%s2423_s20 + $0xd0] sm:$0xff] }
 0x1b3   : > { %v2100_v52 = vadd.f32 %v2322_v62, %v2068_v2 }
 0x1b5   : > { %2132 = vst.msk [vmem:[%s3196_s25 + $0x70] sm:$0xff] %vm393_vm0, %v2100_v52 }
 0x1b6   : > { %v1963_v25 = vpop.f32.mrf.mxu1  ;;  %v1966_v46 = vpop.f32.mrf.mxu2 }
 0x1b7   : > { %v2033_v31 = vmul.f32 %v3153_v61, %v1963_v25  ;;  %v2034_v5 = vmul.f32 %v3153_v61, %v1966_v46 }
 0x1b9   : > { %v2069_v47 = vadd.f32 %v3169_v54, %v2033_v31  ;;  %v2070_v50 = vadd.f32 %v3169_v54, %v2034_v5  ;;  %v2335_v31 = vld [vmem:[%s2423_s20 + $0xd8] sm:$0xff] }
 0x1bb   : > { %v2101_v41 = vadd.f32 %v2323_v27, %v2069_v47  ;;  %v2102_v19 = vadd.f32 %v2324_v34, %v2070_v50  ;;  %v2336_v27 = vld [vmem:[%s2423_s20 + $0xe0] sm:$0xff] }
 0x1bd   : > { %2133 = vst.msk [vmem:[%s3196_s25 + $0x78] sm:$0xff] %vm393_vm0, %v2101_v41 }
 0x1be   : > { %2134 = vst.msk [vmem:[%s3196_s25 + $0x80] sm:$0xff] %vm393_vm0, %v2102_v19  ;;  %v1969_v24 = vpop.f32.mrf.mxu2 }
 0x1bf   : > { %v2035_v14 = vmul.f32 %v3153_v61, %v1969_v24 }
 0x1c1   : > { %v2071_v21 = vadd.f32 %v3169_v54, %v2035_v14  ;;  %v2337_v14 = vld [vmem:[%s2423_s20 + $0xe8] sm:$0xff] }
 0x1c3   : > { %v2103_v13 = vadd.f32 %v2325_v29, %v2071_v21 }
 0x1c5   : > { %2135 = vst.msk [vmem:[%s3196_s25 + $0x88] sm:$0xff] %vm393_vm0, %v2103_v13 }
 0x1c6   : > { %v1972_v10 = vpop.f32.mrf.mxu2 }
 0x1c7   : > { %v2036_v63 = vmul.f32 %v3153_v61, %v1972_v10 }
 0x1c9   : > { %v2072_v38 = vadd.f32 %v3169_v54, %v2036_v63  ;;  %v2338_v63 = vld [vmem:[%s2423_s20 + $0xf0] sm:$0xff] }
 0x1cb   : > { %v2104_v4 = vadd.f32 %v2326_v15, %v2072_v38 }
 0x1cd   : > { %2136 = vst.msk [vmem:[%s3196_s25 + $0x90] sm:$0xff] %vm393_vm0, %v2104_v4 }
 0x1ce   : > { %v1975_v32 = vpop.f32.mrf.mxu2 }
 0x1cf   : > { %v2037_v37 = vmul.f32 %v3153_v61, %v1975_v32 }
 0x1d1   : > { %v2073_v6 = vadd.f32 %v3169_v54, %v2037_v37  ;;  %v2339_v37 = vld [vmem:[%s2423_s20 + $0xf8] sm:$0xff] }
 0x1d3   : > { %v2105_v8 = vadd.f32 %v2327_v0, %v2073_v6 }
 0x1d5   : > { %2137 = vst.msk [vmem:[%s3196_s25 + $0x98] sm:$0xff] %vm393_vm0, %v2105_v8 }
 0x1d6   : > { %v1978_v43 = vpop.f32.mrf.mxu2 }
 0x1d7   : > { %v2038_v23 = vmul.f32 %v3153_v61, %v1978_v43 }
 0x1d9   : > { %v2074_v17 = vadd.f32 %v3169_v54, %v2038_v23 }
 0x1db   : > { %v2106_v3 = vadd.f32 %v2328_v44, %v2074_v17 }
 0x1dd   : > { %2138 = vst.msk [vmem:[%s3196_s25 + $0xa0] sm:$0xff] %vm393_vm0, %v2106_v3 }
 0x1de   : > { %v1981_v12 = vpop.f32.mrf.mxu2 }
 0x1df   : > { %v2039_v57 = vmul.f32 %v3153_v61, %v1981_v12 }
 0x1e1   : > { %v2075_v11 = vadd.f32 %v3169_v54, %v2039_v57 }
 0x1e3   : > { %v2107_v48 = vadd.f32 %v2329_v40, %v2075_v11 }
 0x1e5   : > { %2139 = vst.msk [vmem:[%s3196_s25 + $0xa8] sm:$0xff] %vm393_vm0, %v2107_v48 }
 0x1e6   : > { %v1984_v20 = vpop.f32.mrf.mxu2 }
 0x1e7   : > { %v2040_v39 = vmul.f32 %v3153_v61, %v1984_v20 }
 0x1e9   : > { %v2076_v56 = vadd.f32 %v3169_v54, %v2040_v39 }
 0x1eb   : > { %v2108_v22 = vadd.f32 %v2330_v36, %v2076_v56 }
 0x1ed   : > { %2140 = vst.msk [vmem:[%s3196_s25 + $0xb0] sm:$0xff] %vm393_vm0, %v2108_v22 }
 0x1ee   : > { %v1987_v45 = vpop.f32.mrf.mxu2 }
 0x1ef   : > { %v2041_v1 = vmul.f32 %v3153_v61, %v1987_v45 }
 0x1f1   : > { %v2077_v28 = vadd.f32 %v3169_v54, %v2041_v1 }
 0x1f3   : > { %v2109_v58 = vadd.f32 %v2331_v51, %v2077_v28 }
 0x1f5   : > { %2141 = vst.msk [vmem:[%s3196_s25 + $0xb8] sm:$0xff] %vm393_vm0, %v2109_v58 }
 0x1f6   : > { %v1990_v55 = vpop.f32.mrf.mxu2 }
 0x1f7   : > { %v2042_v42 = vmul.f32 %v3153_v61, %v1990_v55 }
 0x1f9   : > { %v2078_v49 = vadd.f32 %v3169_v54, %v2042_v42 }
 0x1fb   : > { %v2110_v30 = vadd.f32 %v2332_v26, %v2078_v49 }
 0x1fd   : > { %2142 = vst.msk [vmem:[%s3196_s25 + $0xc0] sm:$0xff] %vm393_vm0, %v2110_v30 }
 0x1fe   : > { %v1993_v60 = vpop.f32.mrf.mxu2 }
 0x1ff   : > { %v2043_v53 = vmul.f32 %v3153_v61, %v1993_v60 }
 0x201   : > { %v2079_v16 = vadd.f32 %v3169_v54, %v2043_v53 }
 0x203   : > { %v2111_v33 = vadd.f32 %v2333_v59, %v2079_v16 }
 0x205   : > { %2143 = vst.msk [vmem:[%s3196_s25 + $0xc8] sm:$0xff] %vm393_vm0, %v2111_v33 }
 0x206   : > { %v1996_v18 = vpop.f32.mrf.mxu2 }
 0x207   : > { %v2044_v35 = vmul.f32 %v3153_v61, %v1996_v18 }
 0x209   : > { %v2080_v7 = vadd.f32 %v3169_v54, %v2044_v35 }
 0x20b   : > { %v2112_v2 = vadd.f32 %v2334_v9, %v2080_v7 }
 0x20d   : > { %2144 = vst.msk [vmem:[%s3196_s25 + $0xd0] sm:$0xff] %vm393_vm0, %v2112_v2 }
 0x20e   : > { %v1999_v62 = vpop.f32.mrf.mxu2 }
 0x20f   : > { %v2045_v52 = vmul.f32 %v3153_v61, %v1999_v62 }
 0x211   : > { %v2081_v25 = vadd.f32 %v3169_v54, %v2045_v52 }
 0x213   : > { %v2113_v46 = vadd.f32 %v2335_v31, %v2081_v25 }
 0x215   : > { %2145 = vst.msk [vmem:[%s3196_s25 + $0xd8] sm:$0xff] %vm393_vm0, %v2113_v46 }
 0x216   : > { %v2002_v5 = vpop.f32.mrf.mxu2 }
 0x217   : > { %v2046_v47 = vmul.f32 %v3153_v61, %v2002_v5 }
 0x219   : > { %v2082_v50 = vadd.f32 %v3169_v54, %v2046_v47 }
 0x21b   : > { %v2114_v41 = vadd.f32 %v2336_v27, %v2082_v50 }
 0x21d   : > { %2146 = vst.msk [vmem:[%s3196_s25 + $0xe0] sm:$0xff] %vm393_vm0, %v2114_v41 }
 0x21e   : > { %v2005_v34 = vpop.f32.mrf.mxu2 }
 0x21f   : > { %v2047_v19 = vmul.f32 %v3153_v61, %v2005_v34 }
 0x221   : > { %v2083_v24 = vadd.f32 %v3169_v54, %v2047_v19 }
 0x223   : > { %v2115_v21 = vadd.f32 %v2337_v14, %v2083_v24 }
 0x225   : > { %2147 = vst.msk [vmem:[%s3196_s25 + $0xe8] sm:$0xff] %vm393_vm0, %v2115_v21 }
 0x226   : > { %v2008_v29 = vpop.f32.mrf.mxu2 }
 0x227   : > { %v2048_v13 = vmul.f32 %v3153_v61, %v2008_v29 }
 0x229   : > { %v2084_v10 = vadd.f32 %v3169_v54, %v2048_v13 }
 0x22b   : > { %v2116_v38 = vadd.f32 %v2338_v63, %v2084_v10 }
 0x22d   : > { %2148 = vst.msk [vmem:[%s3196_s25 + $0xf0] sm:$0xff] %vm393_vm0, %v2116_v38 }
 0x22e   : > { %v2011_v15 = vpop.f32.mrf.mxu2 }
 0x22f   : > { %v2049_v4 = vmul.f32 %v3153_v61, %v2011_v15 }
 0x231   : > { %v2085_v32 = vadd.f32 %v3169_v54, %v2049_v4 }
 0x233   : > { %v2117_v6 = vadd.f32 %v2339_v37, %v2085_v32 }
 0x235   : > { %2149 = vst.msk [vmem:[%s3196_s25 + $0xf8] sm:$0xff] %vm393_vm0, %v2117_v6 }
 0x236 PF: > { %s20_s13 = sadd.s32 1, %s2346_s13  }
 0x237   : > { %p17_p4 = scmp.ge.s32.totalorder %s20_s13, 4  }
 0x239   :  { %19 = sbr.rel (!%p17_p4) target bundleno = 1 (0x1), region = 93 }

</bundles_post_ra>
